<compile_context>
chip_gen: v7x
topology: tpu7x:2x2x1
jax: 0.10.0
libtpu: 0.0.40
codegen_flags: <defaults>
</compile_context>

<pallas_src>
import functools
import math

import jax
import jax.numpy as jnp
from jax import lax
from jax.experimental import pallas as pl
from jax.experimental.pallas import tpu as pltpu

C_PAD = 128   # lane-dense channel / feature padding
KSIZE = 3     # spec: nn.Conv2d(..., kernel_size=3)


# ----------------------------------------------------------------------------
# Shape helpers (same math as the PyTorch conv_cal)
# ----------------------------------------------------------------------------
def conv_cal(c, kernel_size, stride=None, padding=0, operation='conv'):
    if stride is None:
        stride = 1 if operation == 'conv' else kernel_size
    l_return = (c - kernel_size + 2 * padding) / stride + 1
    return math.ceil(l_return) if operation == 'conv' else math.floor(l_return)


def _round_up(n, m):
    return ((n + m - 1) // m) * m


def _pick_block_batch(batch):
    # Prefer a bigger M per grid step, but keep grid length >= 2 when possible
    # so v7x's 2 TensorCores both get work.
    for nb in (8, 4, 2):
        if batch % nb == 0 and batch // nb >= 2:
            return nb
    return 1


# ----------------------------------------------------------------------------
# Fused kernel: one grid step == NB images, everything in VMEM
# ----------------------------------------------------------------------------
def _cnn_fused_kernel(xcols_ref, w1_ref, b1_ref, w2_ref, b2_ref,
                      p1_ref, p2_ref, wf1_ref, bf1_ref, wo_ref, bo_ref,
                      out_ref,
                      act1_ref, pool1_ref,
                      *, nb, r1, l2, wp1, ksz, npos):
    f32 = jnp.float32
    cdt = act1_ref.dtype   # MXU operand dtype (bf16 or f32); accumulation f32

    # ---- conv1 + bias + ReLU: ONE tap-packed (nb*r1,128)@(128,128) matmul ----
    xc = xcols_ref[...].reshape(nb * r1, C_PAD)
    y1 = jnp.dot(xc, w1_ref[...], preferred_element_type=f32)
    y1 = jnp.maximum(y1 + b1_ref[...], 0.0)
    act1_ref[...] = y1.reshape(nb, r1, C_PAD).astype(cdt)

    p2_vals = []
    for b in range(nb):
        # pool1: one (RP1,r1)@(r1,128) matmul; output kept in a flat row layout
        # (row = i*wp1 + j, zero-padded) so conv2 tap windows are contiguous.
        p1v = jnp.dot(p1_ref[...], act1_ref[b], preferred_element_type=f32)
        pool1_ref[...] = p1v.astype(cdt)

        # conv2 + bias + ReLU: ksz*ksz tap matmuls, each (l2,128)@(128,128).
        acc2 = jnp.zeros((l2, C_PAD), f32)
        for t in range(ksz * ksz):
            dh, dw = t // ksz, t % ksz
            s = dh * wp1 + dw                      # flat window offset (static)
            acc2 = acc2 + jnp.dot(pool1_ref[pl.ds(s, l2), :], w2_ref[t],
                                  preferred_element_type=f32)
        y2 = jnp.maximum(acc2 + b2_ref[...], 0.0).astype(cdt)

        # pool2 fused into the conv2 epilogue: one (RP2,l2)@(l2,128) matmul.
        p2_vals.append(jnp.dot(p2_ref[...], y2,
                               preferred_element_type=f32).astype(cdt))

    # ---- FC1 + ReLU: npos matmuls of (nb,128)@(128,128).  The torch NCHW
    # flatten is folded into the pre-permuted wf1 blocks (no transposes). ----
    hacc = jnp.zeros((nb, C_PAD), f32)
    for p in range(npos):
        lhs = jnp.concatenate([p2_vals[b][p:p + 1, :] for b in range(nb)],
                              axis=0)                       # (nb, 128)
        hacc = hacc + jnp.dot(lhs, wf1_ref[p], preferred_element_type=f32)
    hidden = jnp.maximum(hacc + bf1_ref[...], 0.0).astype(cdt)

    # ---- output layer: (nb,128)@(128,128), lane-dense store ----
    logits = jnp.dot(hidden, wo_ref[...], preferred_element_type=f32) + bo_ref[...]
    for b in range(nb):
        out_ref[b] = logits[b:b + 1, :]


# ----------------------------------------------------------------------------
# Weight / constant-matrix preparation (tiny, done once inside jit)
# ----------------------------------------------------------------------------
def _pad_bias(v):
    out = jnp.zeros((1, C_PAD), jnp.float32)
    return out.at[0, :v.shape[0]].set(v.astype(jnp.float32))


def _prep_conv1_w(w_oihw, cdt):
    # (O, I, kh, kw) -> tap-packed (128, 128): row = (dh*kw+dw)*I + c, col = o
    O, I, kh, kw = w_oihw.shape
    wt = jnp.transpose(w_oihw, (2, 3, 1, 0)).reshape(kh * kw * I, O)
    out = jnp.zeros((C_PAD, C_PAD), jnp.float32).at[:kh * kw * I, :O].set(
        wt.astype(jnp.float32))
    return out.astype(cdt)


def _prep_conv2_w(w_oihw, cdt):
    # (O, I, kh, kw) -> (kh*kw, 128, 128): per-tap (cin -> cout) blocks
    O, I, kh, kw = w_oihw.shape
    wt = jnp.transpose(w_oihw, (2, 3, 1, 0)).reshape(kh * kw, I, O)
    out = jnp.zeros((kh * kw, C_PAD, C_PAD), jnp.float32).at[:, :I, :O].set(
        wt.astype(jnp.float32))
    return out.astype(cdt)


def _prep_fc1_w(w_in_out, c2, npos, cdt):
    # (c2*npos, F) with torch NCHW flatten order (flat = c*npos + p)
    #   -> (npos, 128, 128) blocks mapping channel lanes -> hidden lanes
    F = w_in_out.shape[1]
    w = w_in_out.reshape(c2, npos, F).astype(jnp.float32)
    w = jnp.transpose(w, (1, 0, 2))                         # (npos, c2, F)
    out = jnp.zeros((npos, C_PAD, C_PAD), jnp.float32).at[:, :c2, :F].set(w)
    return out.astype(cdt)


def _prep_fc_w(w_in_out, cdt):
    I, O = w_in_out.shape
    out = jnp.zeros((C_PAD, C_PAD), jnp.float32).at[:I, :O].set(
        w_in_out.astype(jnp.float32))
    return out.astype(cdt)


def _pool1_matrix(hp1, wp1, wo1, ws1, r1, rp1, cdt):
    # (rp1, r1): row q = i*wp1 + j (pooled pixel), col m = h*ws1 + w (conv1
    # flat row); 0.25 where (h,w) is inside pooled window (i,j).
    q = jnp.arange(rp1)
    i, j = q // wp1, q % wp1
    m = jnp.arange(r1)
    h, w = m // ws1, m % ws1
    cond = ((q[:, None] < hp1 * wp1)
            & (h[None, :] // 2 == i[:, None])
            & (w[None, :] // 2 == j[:, None])
            & (w[None, :] < wo1))
    return jnp.where(cond, 0.25, 0.0).astype(cdt)


def _pool2_matrix(hp2, wp2, wp1, l2, rp2, cdt):
    # (rp2, l2): row p = a*wp2 + b (pooled pixel), col r = i*wp1 + j (conv2
    # flat-window row); garbage window columns are excluded automatically.
    p = jnp.arange(rp2)
    a, b = p // wp2, p % wp2
    r = jnp.arange(l2)
    i, j = r // wp1, r % wp1
    cond = ((p[:, None] < hp2 * wp2)
            & (i[None, :] // 2 == a[:, None])
            & (j[None, :] // 2 == b[:, None]))
    return jnp.where(cond, 0.25, 0.0).astype(cdt)


# ----------------------------------------------------------------------------
# Forward pass (single fused pallas_call)
# ----------------------------------------------------------------------------
def cnn_forward(x_nchw, params, compute_dtype=jnp.bfloat16):
    B, C, H, W = x_nchw.shape
    K = KSIZE
    Ho1, Wo1 = H - K + 1, W - K + 1
    Hp1, Wp1 = Ho1 // 2, Wo1 // 2
    Ho2, Wo2 = Hp1 - K + 1, Wp1 - K + 1
    Hp2, Wp2 = Ho2 // 2, Wo2 // 2
    O1 = params['w1'].shape[0]
    C2 = params['w2'].shape[0]
    F1 = params['bf1'].shape[0]
    num_classes = params['bout'].shape[0]
    npos = Hp2 * Wp2
    assert K * K * C <= C_PAD and O1 <= C_PAD and C2 <= C_PAD
    assert F1 <= C_PAD and num_classes <= C_PAD
    cdt = compute_dtype
    f32 = jnp.float32

    # Flat-layout constants.
    WS1 = _round_up(Wo1, 8)                       # conv1 flat row stride
    R1 = Ho1 * WS1                                # conv1 rows / image
    L2 = _round_up((Ho2 - 1) * Wp1 + Wo2, 8)      # conv2 flat window length
    RP1 = _round_up(max(Hp1 * Wp1, (K - 1) * Wp1 + (K - 1) + L2), 8)
    RP2 = _round_up(npos, 8)
    NB = _pick_block_batch(B)

    # ---- conv1 im2col in the wrapper (layout plumbing): rows = (ho, wo) flat
    # with wo padded to WS1, lanes = tap*C + c padded to 128. ----
    xt = jnp.transpose(x_nchw, (0, 2, 3, 1)).astype(f32)        # NHWC
    patches = [xt[:, dh:dh + Ho1, dw:dw + Wo1, :]
               for dh in range(K) for dw in range(K)]
    cols = jnp.concatenate(patches, axis=-1)                    # (B,Ho1,Wo1,K*K*C)
    cols = jnp.pad(cols, ((0, 0), (0, 0), (0, WS1 - Wo1),
                          (0, C_PAD - K * K * C)))
    xcols = cols.reshape(B, R1, C_PAD).astype(cdt)

    # ---- weights / constants ----
    w1p = _prep_conv1_w(params['w1'], cdt);   b1 = _pad_bias(params['b1'])
    w2p = _prep_conv2_w(params['w2'], cdt);   b2 = _pad_bias(params['b2'])
    wf1p = _prep_fc1_w(params['wf1'], C2, npos, cdt)
    bf1 = _pad_bias(params['bf1'])
    wop = _prep_fc_w(params['wout'], cdt);    bo = _pad_bias(params['bout'])
    p1m = _pool1_matrix(Hp1, Wp1, Wo1, WS1, R1, RP1, cdt)
    p2m = _pool2_matrix(Hp2, Wp2, Wp1, L2, RP2, cdt)

    def _const_spec(shape):
        zeros = (0,) * len(shape)
        return pl.BlockSpec(shape, lambda g, _z=zeros: _z)

    out = pl.pallas_call(
        functools.partial(_cnn_fused_kernel, nb=NB, r1=R1, l2=L2, wp1=Wp1,
                          ksz=K, npos=npos),
        out_shape=jax.ShapeDtypeStruct((B, 1, C_PAD), jnp.float32),
        grid_spec=pltpu.PrefetchScalarGridSpec(
            num_scalar_prefetch=0,
            grid=(B // NB,),
            in_specs=[
                pl.BlockSpec((NB, R1, C_PAD), lambda g: (g, 0, 0)),
                _const_spec((C_PAD, C_PAD)), _const_spec((1, C_PAD)),
                _const_spec((K * K, C_PAD, C_PAD)), _const_spec((1, C_PAD)),
                _const_spec((RP1, R1)), _const_spec((RP2, L2)),
                _const_spec((npos, C_PAD, C_PAD)), _const_spec((1, C_PAD)),
                _const_spec((C_PAD, C_PAD)), _const_spec((1, C_PAD)),
            ],
            out_specs=pl.BlockSpec((NB, 1, C_PAD), lambda g: (g, 0, 0)),
            scratch_shapes=[
                pltpu.VMEM((NB, R1, C_PAD), cdt),     # conv1 act (flat rows)
                pltpu.VMEM((RP1, C_PAD), cdt),        # pool1 (flat rows)
            ],
        ),
        compiler_params=pltpu.CompilerParams(
            dimension_semantics=("parallel",),
        ),
    )(xcols, w1p, b1, w2p, b2, p1m, p2m, wf1p, bf1, wop, bo)

    return out[:, 0, :num_classes]


# ----------------------------------------------------------------------------
# Parameter init (PyTorch-style shapes; linear weights stored as (in, out))
# ----------------------------------------------------------------------------
def init_params(key, h, w, c, num_classes):
    h_conv = conv_cal(conv_cal(conv_cal(conv_cal(h, 3), 2, operation='pool'), 3),
                      2, operation='pool')
    w_conv = conv_cal(conv_cal(conv_cal(conv_cal(w, 3), 2, operation='pool'), 3),
                      2, operation='pool')
    flat = 16 * h_conv * w_conv
    keys = jax.random.split(key, 8)

    def u(k, shape, fan_in):
        bound = 1.0 / math.sqrt(fan_in)
        return jax.random.uniform(k, shape, jnp.float32, -bound, bound)

    return {
        'w1': u(keys[0], (6, c, 3, 3), c * 9),
        'b1': u(keys[1], (6,), c * 9),
        'w2': u(keys[2], (16, 6, 3, 3), 6 * 9),
        'b2': u(keys[3], (16,), 6 * 9),
        'wf1': u(keys[4], (flat, 64), flat),
        'bf1': u(keys[5], (64,), flat),
        'wout': u(keys[6], (64, num_classes), 64),
        'bout': u(keys[7], (num_classes,), 64),
    }


# ----------------------------------------------------------------------------
# Pure-JAX reference (same math as the PyTorch module) for validation
# ----------------------------------------------------------------------------
def _reference_forward(x, params):
    prec = jax.lax.Precision.HIGHEST

    def conv(y, w, b):
        y = lax.conv_general_dilated(y, w, (1, 1), 'VALID',
                                     dimension_numbers=('NCHW', 'OIHW', 'NCHW'),
                                     precision=prec)
        return jax.nn.relu(y + b[None, :, None, None])

    def pool(y):
        return lax.reduce_window(y, 0.0, lax.add, (1, 1, 2, 2), (1, 1, 2, 2),
                                 'VALID') * 0.25

    y = pool(conv(x, params['w1'], params['b1']))
    y = pool(conv(y, params['w2'], params['b2']))
    y = y.reshape(y.shape[0], -1)
    y = jax.nn.relu(jnp.dot(y, params['wf1'], precision=prec) + params['bf1'])
    return jnp.dot(y, params['wout'], precision=prec) + params['bout']


if __name__ == "__main__":
    # batch=2, channels=4, spatial 16x16, 10 classes
    # conv1: 14x14x6 -> pool: 7x7x6 -> conv2: 5x5x16 -> pool: 2x2x16 -> flat 64
    B, C, H, W, NUM_CLASSES = 2, 4, 16, 16, 10

    key = jax.random.PRNGKey(0)
    k_x, k_p = jax.random.split(key)
    x = jax.random.normal(k_x, (B, C, H, W), jnp.float32)
    params = init_params(k_p, H, W, C, NUM_CLASSES)

    ref = jax.block_until_ready(_reference_forward(x, params))

    # Exact-parity f32 run (all MXU operands f32).
    fwd_f32 = jax.jit(functools.partial(cnn_forward, compute_dtype=jnp.float32))
    out_f32 = jax.block_until_ready(fwd_f32(x, params))
    assert out_f32.shape == (B, NUM_CLASSES), out_f32.shape
    assert bool(jnp.all(jnp.isfinite(out_f32)))
    err_f32 = float(jnp.max(jnp.abs(out_f32 - ref)))
    assert err_f32 < 1e-3, f"f32 kernel max abs err vs reference: {err_f32}"

    # Performance configuration: bf16 MXU operands, f32 accumulation.
    fwd_bf16 = jax.jit(functools.partial(cnn_forward, compute_dtype=jnp.bfloat16))
    out_bf16 = jax.block_until_ready(fwd_bf16(x, params))
    assert out_bf16.shape == (B, NUM_CLASSES), out_bf16.shape
    assert bool(jnp.all(jnp.isfinite(out_bf16)))
    err_bf16 = float(jnp.max(jnp.abs(out_bf16 - ref)))
    assert err_bf16 < 5e-2, f"bf16 kernel max abs err vs reference: {err_bf16}"

    print("KERNEL_OK")
</pallas_src>

<mosaic_0001>
module attributes {stable_mosaic.version = 11 : i64} {
  func.func @_cnn_fused_kernel(%arg0: i32, %arg1: memref<1x224x128xf32, #tpu.memory_space<vmem>>, %arg2: memref<128x128xf32, #tpu.memory_space<vmem>>, %arg3: memref<1x128xf32, #tpu.memory_space<vmem>>, %arg4: memref<9x128x128xf32, #tpu.memory_space<vmem>>, %arg5: memref<1x128xf32, #tpu.memory_space<vmem>>, %arg6: memref<56x224xf32, #tpu.memory_space<vmem>>, %arg7: memref<8x40xf32, #tpu.memory_space<vmem>>, %arg8: memref<4x128x128xf32, #tpu.memory_space<vmem>>, %arg9: memref<1x128xf32, #tpu.memory_space<vmem>>, %arg10: memref<128x128xf32, #tpu.memory_space<vmem>>, %arg11: memref<1x128xf32, #tpu.memory_space<vmem>>, %arg12: memref<1x1x128xf32, #tpu.memory_space<vmem>>, %arg13: memref<1x224x128xf32, #tpu.memory_space<vmem>>, %arg14: memref<56x128xf32, #tpu.memory_space<vmem>>) attributes {dimension_semantics = [#tpu.dimension_semantics<parallel>], iteration_bounds = array<i64: 2>, scalar_prefetch = 0 : i64, scratch_operands = 2 : i64, tpu.core_type = #tpu.core_type<tc>, window_params = [{transform_indices = @transform_0, window_bounds = array<i64: 1, 224, 128>}, {pipeline_mode = #tpu.pipeline_mode<synchronous>, transform_indices = @transform_1, window_bounds = array<i64: 128, 128>}, {pipeline_mode = #tpu.pipeline_mode<synchronous>, transform_indices = @transform_2, window_bounds = array<i64: 1, 128>}, {pipeline_mode = #tpu.pipeline_mode<synchronous>, transform_indices = @transform_3, window_bounds = array<i64: 9, 128, 128>}, {pipeline_mode = #tpu.pipeline_mode<synchronous>, transform_indices = @transform_4, window_bounds = array<i64: 1, 128>}, {pipeline_mode = #tpu.pipeline_mode<synchronous>, transform_indices = @transform_5, window_bounds = array<i64: 56, 224>}, {pipeline_mode = #tpu.pipeline_mode<synchronous>, transform_indices = @transform_6, window_bounds = array<i64: 8, 40>}, {pipeline_mode = #tpu.pipeline_mode<synchronous>, transform_indices = @transform_7, window_bounds = array<i64: 4, 128, 128>}, {pipeline_mode = #tpu.pipeline_mode<synchronous>, transform_indices = @transform_8, window_bounds = array<i64: 1, 128>}, {pipeline_mode = #tpu.pipeline_mode<synchronous>, transform_indices = @transform_9, window_bounds = array<i64: 128, 128>}, {pipeline_mode = #tpu.pipeline_mode<synchronous>, transform_indices = @transform_10, window_bounds = array<i64: 1, 128>}, {transform_indices = @transform_11, window_bounds = array<i64: 1, 1, 128>}]} {
    %c0 = arith.constant 0 : index
    %c0_0 = arith.constant 0 : index
    %c0_1 = arith.constant 0 : index
    %0 = vector.load %arg1[%c0, %c0_0, %c0_1] : memref<1x224x128xf32, #tpu.memory_space<vmem>>, vector<1x224x128xf32>
    %1 = vector.shape_cast %0 : vector<1x224x128xf32> to vector<224x128xf32>
    %c0_2 = arith.constant 0 : index
    %c0_3 = arith.constant 0 : index
    %2 = vector.load %arg2[%c0_2, %c0_3] : memref<128x128xf32, #tpu.memory_space<vmem>>, vector<128x128xf32>
    %cst = arith.constant dense<0.000000e+00> : vector<224x128xf32>
    %3 = tpu.matmul %1, %2, %cst {dimension_numbers = #tpu.dot_dimension_numbers<[1], [0], [0], [1], [0, 0, 1, 1], [], []>} : vector<224x128xf32>, vector<128x128xf32>, vector<224x128xf32> -> vector<224x128xf32>
    %c0_4 = arith.constant 0 : index
    %c0_5 = arith.constant 0 : index
    %4 = vector.load %arg3[%c0_4, %c0_5] : memref<1x128xf32, #tpu.memory_space<vmem>>, vector<1x128xf32>
    %5 = vector.broadcast %4 : vector<1x128xf32> to vector<224x128xf32>
    %6 = arith.addf %3, %5 : vector<224x128xf32>
    %cst_6 = arith.constant 0.000000e+00 : f32
    %7 = vector.broadcast %cst_6 : f32 to vector<224x128xf32>
    %8 = arith.maximumf %6, %7 : vector<224x128xf32>
    %9 = vector.shape_cast %8 : vector<224x128xf32> to vector<1x224x128xf32>
    %c0_7 = arith.constant 0 : index
    %c0_8 = arith.constant 0 : index
    %c0_9 = arith.constant 0 : index
    %10 = vector.load %arg13[%c0_7, %c0_8, %c0_9] : memref<1x224x128xf32, #tpu.memory_space<vmem>>, vector<1x224x128xf32>
    tpu.vector_store %arg13[%c0_7, %c0_8, %c0_9], %9 {strides = array<i32>} : memref<1x224x128xf32, #tpu.memory_space<vmem>>, vector<1x224x128xf32>,
    %c0_10 = arith.constant 0 : index
    %c0_11 = arith.constant 0 : index
    %11 = vector.load %arg6[%c0_10, %c0_11] : memref<56x224xf32, #tpu.memory_space<vmem>>, vector<56x224xf32>
    %c0_12 = arith.constant 0 : index
    %c0_13 = arith.constant 0 : index
    %c0_14 = arith.constant 0 : index
    %12 = vector.load %arg13[%c0_12, %c0_13, %c0_14] : memref<1x224x128xf32, #tpu.memory_space<vmem>>, vector<1x224x128xf32>
    %13 = vector.shape_cast %12 : vector<1x224x128xf32> to vector<224x128xf32>
    %cst_15 = arith.constant dense<0.000000e+00> : vector<56x128xf32>
    %14 = tpu.matmul %11, %13, %cst_15 {dimension_numbers = #tpu.dot_dimension_numbers<[1], [0], [0], [1], [0, 0, 1, 1], [], []>} : vector<56x224xf32>, vector<224x128xf32>, vector<56x128xf32> -> vector<56x128xf32>
    %c0_16 = arith.constant 0 : index
    %c0_17 = arith.constant 0 : index
    %15 = vector.load %arg14[%c0_16, %c0_17] : memref<56x128xf32, #tpu.memory_space<vmem>>, vector<56x128xf32>
    tpu.vector_store %arg14[%c0_16, %c0_17], %14 {strides = array<i32>} : memref<56x128xf32, #tpu.memory_space<vmem>>, vector<56x128xf32>,
    %cst_18 = arith.constant 0.000000e+00 : f32
    %16 = vector.broadcast %cst_18 : f32 to vector<40x128xf32>
    %c0_19 = arith.constant 0 : index
    %c0_20 = arith.constant 0 : index
    %17 = vector.load %arg14[%c0_19, %c0_20] : memref<56x128xf32, #tpu.memory_space<vmem>>, vector<40x128xf32>
    %c0_21 = arith.constant 0 : index
    %c0_22 = arith.constant 0 : index
    %c0_23 = arith.constant 0 : index
    %18 = vector.load %arg4[%c0_21, %c0_22, %c0_23] : memref<9x128x128xf32, #tpu.memory_space<vmem>>, vector<1x128x128xf32>
    %19 = vector.shape_cast %18 : vector<1x128x128xf32> to vector<128x128xf32>
    %cst_24 = arith.constant dense<0.000000e+00> : vector<40x128xf32>
    %20 = tpu.matmul %17, %19, %cst_24 {dimension_numbers = #tpu.dot_dimension_numbers<[1], [0], [0], [1], [0, 0, 1, 1], [], []>} : vector<40x128xf32>, vector<128x128xf32>, vector<40x128xf32> -> vector<40x128xf32>
    %21 = arith.addf %16, %20 : vector<40x128xf32>
    %c1 = arith.constant 1 : index
    %c0_25 = arith.constant 0 : index
    %22 = vector.load %arg14[%c1, %c0_25] : memref<56x128xf32, #tpu.memory_space<vmem>>, vector<40x128xf32>
    %c1_26 = arith.constant 1 : index
    %c0_27 = arith.constant 0 : index
    %c0_28 = arith.constant 0 : index
    %23 = vector.load %arg4[%c1_26, %c0_27, %c0_28] : memref<9x128x128xf32, #tpu.memory_space<vmem>>, vector<1x128x128xf32>
    %24 = vector.shape_cast %23 : vector<1x128x128xf32> to vector<128x128xf32>
    %cst_29 = arith.constant dense<0.000000e+00> : vector<40x128xf32>
    %25 = tpu.matmul %22, %24, %cst_29 {dimension_numbers = #tpu.dot_dimension_numbers<[1], [0], [0], [1], [0, 0, 1, 1], [], []>} : vector<40x128xf32>, vector<128x128xf32>, vector<40x128xf32> -> vector<40x128xf32>
    %26 = arith.addf %21, %25 : vector<40x128xf32>
    %c2 = arith.constant 2 : index
    %c0_30 = arith.constant 0 : index
    %27 = vector.load %arg14[%c2, %c0_30] : memref<56x128xf32, #tpu.memory_space<vmem>>, vector<40x128xf32>
    %c2_31 = arith.constant 2 : index
    %c0_32 = arith.constant 0 : index
    %c0_33 = arith.constant 0 : index
    %28 = vector.load %arg4[%c2_31, %c0_32, %c0_33] : memref<9x128x128xf32, #tpu.memory_space<vmem>>, vector<1x128x128xf32>
    %29 = vector.shape_cast %28 : vector<1x128x128xf32> to vector<128x128xf32>
    %cst_34 = arith.constant dense<0.000000e+00> : vector<40x128xf32>
    %30 = tpu.matmul %27, %29, %cst_34 {dimension_numbers = #tpu.dot_dimension_numbers<[1], [0], [0], [1], [0, 0, 1, 1], [], []>} : vector<40x128xf32>, vector<128x128xf32>, vector<40x128xf32> -> vector<40x128xf32>
    %31 = arith.addf %26, %30 : vector<40x128xf32>
    %c7 = arith.constant 7 : index
    %c0_35 = arith.constant 0 : index
    %32 = vector.load %arg14[%c7, %c0_35] : memref<56x128xf32, #tpu.memory_space<vmem>>, vector<40x128xf32>
    %c3 = arith.constant 3 : index
    %c0_36 = arith.constant 0 : index
    %c0_37 = arith.constant 0 : index
    %33 = vector.load %arg4[%c3, %c0_36, %c0_37] : memref<9x128x128xf32, #tpu.memory_space<vmem>>, vector<1x128x128xf32>
    %34 = vector.shape_cast %33 : vector<1x128x128xf32> to vector<128x128xf32>
    %cst_38 = arith.constant dense<0.000000e+00> : vector<40x128xf32>
    %35 = tpu.matmul %32, %34, %cst_38 {dimension_numbers = #tpu.dot_dimension_numbers<[1], [0], [0], [1], [0, 0, 1, 1], [], []>} : vector<40x128xf32>, vector<128x128xf32>, vector<40x128xf32> -> vector<40x128xf32>
    %36 = arith.addf %31, %35 : vector<40x128xf32>
    %c8 = arith.constant 8 : index
    %c0_39 = arith.constant 0 : index
    %37 = vector.load %arg14[%c8, %c0_39] : memref<56x128xf32, #tpu.memory_space<vmem>>, vector<40x128xf32>
    %c4 = arith.constant 4 : index
    %c0_40 = arith.constant 0 : index
    %c0_41 = arith.constant 0 : index
    %38 = vector.load %arg4[%c4, %c0_40, %c0_41] : memref<9x128x128xf32, #tpu.memory_space<vmem>>, vector<1x128x128xf32>
    %39 = vector.shape_cast %38 : vector<1x128x128xf32> to vector<128x128xf32>
    %cst_42 = arith.constant dense<0.000000e+00> : vector<40x128xf32>
    %40 = tpu.matmul %37, %39, %cst_42 {dimension_numbers = #tpu.dot_dimension_numbers<[1], [0], [0], [1], [0, 0, 1, 1], [], []>} : vector<40x128xf32>, vector<128x128xf32>, vector<40x128xf32> -> vector<40x128xf32>
    %41 = arith.addf %36, %40 : vector<40x128xf32>
    %c9 = arith.constant 9 : index
    %c0_43 = arith.constant 0 : index
    %42 = vector.load %arg14[%c9, %c0_43] : memref<56x128xf32, #tpu.memory_space<vmem>>, vector<40x128xf32>
    %c5 = arith.constant 5 : index
    %c0_44 = arith.constant 0 : index
    %c0_45 = arith.constant 0 : index
    %43 = vector.load %arg4[%c5, %c0_44, %c0_45] : memref<9x128x128xf32, #tpu.memory_space<vmem>>, vector<1x128x128xf32>
    %44 = vector.shape_cast %43 : vector<1x128x128xf32> to vector<128x128xf32>
    %cst_46 = arith.constant dense<0.000000e+00> : vector<40x128xf32>
    %45 = tpu.matmul %42, %44, %cst_46 {dimension_numbers = #tpu.dot_dimension_numbers<[1], [0], [0], [1], [0, 0, 1, 1], [], []>} : vector<40x128xf32>, vector<128x128xf32>, vector<40x128xf32> -> vector<40x128xf32>
    %46 = arith.addf %41, %45 : vector<40x128xf32>
    %c14 = arith.constant 14 : index
    %c0_47 = arith.constant 0 : index
    %47 = vector.load %arg14[%c14, %c0_47] : memref<56x128xf32, #tpu.memory_space<vmem>>, vector<40x128xf32>
    %c6 = arith.constant 6 : index
    %c0_48 = arith.constant 0 : index
    %c0_49 = arith.constant 0 : index
    %48 = vector.load %arg4[%c6, %c0_48, %c0_49] : memref<9x128x128xf32, #tpu.memory_space<vmem>>, vector<1x128x128xf32>
    %49 = vector.shape_cast %48 : vector<1x128x128xf32> to vector<128x128xf32>
    %cst_50 = arith.constant dense<0.000000e+00> : vector<40x128xf32>
    %50 = tpu.matmul %47, %49, %cst_50 {dimension_numbers = #tpu.dot_dimension_numbers<[1], [0], [0], [1], [0, 0, 1, 1], [], []>} : vector<40x128xf32>, vector<128x128xf32>, vector<40x128xf32> -> vector<40x128xf32>
    %51 = arith.addf %46, %50 : vector<40x128xf32>
    %c15 = arith.constant 15 : index
    %c0_51 = arith.constant 0 : index
    %52 = vector.load %arg14[%c15, %c0_51] : memref<56x128xf32, #tpu.memory_space<vmem>>, vector<40x128xf32>
    %c7_52 = arith.constant 7 : index
    %c0_53 = arith.constant 0 : index
    %c0_54 = arith.constant 0 : index
    %53 = vector.load %arg4[%c7_52, %c0_53, %c0_54] : memref<9x128x128xf32, #tpu.memory_space<vmem>>, vector<1x128x128xf32>
    %54 = vector.shape_cast %53 : vector<1x128x128xf32> to vector<128x128xf32>
    %cst_55 = arith.constant dense<0.000000e+00> : vector<40x128xf32>
    %55 = tpu.matmul %52, %54, %cst_55 {dimension_numbers = #tpu.dot_dimension_numbers<[1], [0], [0], [1], [0, 0, 1, 1], [], []>} : vector<40x128xf32>, vector<128x128xf32>, vector<40x128xf32> -> vector<40x128xf32>
    %56 = arith.addf %51, %55 : vector<40x128xf32>
    %c16 = arith.constant 16 : index
    %c0_56 = arith.constant 0 : index
    %57 = vector.load %arg14[%c16, %c0_56] : memref<56x128xf32, #tpu.memory_space<vmem>>, vector<40x128xf32>
    %c8_57 = arith.constant 8 : index
    %c0_58 = arith.constant 0 : index
    %c0_59 = arith.constant 0 : index
    %58 = vector.load %arg4[%c8_57, %c0_58, %c0_59] : memref<9x128x128xf32, #tpu.memory_space<vmem>>, vector<1x128x128xf32>
    %59 = vector.shape_cast %58 : vector<1x128x128xf32> to vector<128x128xf32>
    %cst_60 = arith.constant dense<0.000000e+00> : vector<40x128xf32>
    %60 = tpu.matmul %57, %59, %cst_60 {dimension_numbers = #tpu.dot_dimension_numbers<[1], [0], [0], [1], [0, 0, 1, 1], [], []>} : vector<40x128xf32>, vector<128x128xf32>, vector<40x128xf32> -> vector<40x128xf32>
    %61 = arith.addf %56, %60 : vector<40x128xf32>
    %c0_61 = arith.constant 0 : index
    %c0_62 = arith.constant 0 : index
    %62 = vector.load %arg5[%c0_61, %c0_62] : memref<1x128xf32, #tpu.memory_space<vmem>>, vector<1x128xf32>
    %63 = vector.broadcast %62 : vector<1x128xf32> to vector<40x128xf32>
    %64 = arith.addf %61, %63 : vector<40x128xf32>
    %cst_63 = arith.constant 0.000000e+00 : f32
    %65 = vector.broadcast %cst_63 : f32 to vector<40x128xf32>
    %66 = arith.maximumf %64, %65 : vector<40x128xf32>
    %c0_64 = arith.constant 0 : index
    %c0_65 = arith.constant 0 : index
    %67 = vector.load %arg7[%c0_64, %c0_65] : memref<8x40xf32, #tpu.memory_space<vmem>>, vector<8x40xf32>
    %cst_66 = arith.constant dense<0.000000e+00> : vector<8x128xf32>
    %68 = tpu.matmul %67, %66, %cst_66 {dimension_numbers = #tpu.dot_dimension_numbers<[1], [0], [0], [1], [0, 0, 1, 1], [], []>} : vector<8x40xf32>, vector<40x128xf32>, vector<8x128xf32> -> vector<8x128xf32>
    %cst_67 = arith.constant 0.000000e+00 : f32
    %69 = vector.broadcast %cst_67 : f32 to vector<1x128xf32>
    %70 = vector.extract_strided_slice %68 {offsets = [0, 0], sizes = [1, 128], strides = [1, 1]} : vector<8x128xf32> to vector<1x128xf32>
    %c0_68 = arith.constant 0 : index
    %c0_69 = arith.constant 0 : index
    %c0_70 = arith.constant 0 : index
    %71 = vector.load %arg8[%c0_68, %c0_69, %c0_70] : memref<4x128x128xf32, #tpu.memory_space<vmem>>, vector<1x128x128xf32>
    %72 = vector.shape_cast %71 : vector<1x128x128xf32> to vector<128x128xf32>
    %cst_71 = arith.constant dense<0.000000e+00> : vector<1x128xf32>
    %73 = tpu.matmul %70, %72, %cst_71 {dimension_numbers = #tpu.dot_dimension_numbers<[1], [0], [0], [1], [0, 0, 1, 1], [], []>} : vector<1x128xf32>, vector<128x128xf32>, vector<1x128xf32> -> vector<1x128xf32>
    %74 = arith.addf %69, %73 : vector<1x128xf32>
    %75 = vector.extract_strided_slice %68 {offsets = [1, 0], sizes = [1, 128], strides = [1, 1]} : vector<8x128xf32> to vector<1x128xf32>
    %c1_72 = arith.constant 1 : index
    %c0_73 = arith.constant 0 : index
    %c0_74 = arith.constant 0 : index
    %76 = vector.load %arg8[%c1_72, %c0_73, %c0_74] : memref<4x128x128xf32, #tpu.memory_space<vmem>>, vector<1x128x128xf32>
    %77 = vector.shape_cast %76 : vector<1x128x128xf32> to vector<128x128xf32>
    %cst_75 = arith.constant dense<0.000000e+00> : vector<1x128xf32>
    %78 = tpu.matmul %75, %77, %cst_75 {dimension_numbers = #tpu.dot_dimension_numbers<[1], [0], [0], [1], [0, 0, 1, 1], [], []>} : vector<1x128xf32>, vector<128x128xf32>, vector<1x128xf32> -> vector<1x128xf32>
    %79 = arith.addf %74, %78 : vector<1x128xf32>
    %80 = vector.extract_strided_slice %68 {offsets = [2, 0], sizes = [1, 128], strides = [1, 1]} : vector<8x128xf32> to vector<1x128xf32>
    %c2_76 = arith.constant 2 : index
    %c0_77 = arith.constant 0 : index
    %c0_78 = arith.constant 0 : index
    %81 = vector.load %arg8[%c2_76, %c0_77, %c0_78] : memref<4x128x128xf32, #tpu.memory_space<vmem>>, vector<1x128x128xf32>
    %82 = vector.shape_cast %81 : vector<1x128x128xf32> to vector<128x128xf32>
    %cst_79 = arith.constant dense<0.000000e+00> : vector<1x128xf32>
    %83 = tpu.matmul %80, %82, %cst_79 {dimension_numbers = #tpu.dot_dimension_numbers<[1], [0], [0], [1], [0, 0, 1, 1], [], []>} : vector<1x128xf32>, vector<128x128xf32>, vector<1x128xf32> -> vector<1x128xf32>
    %84 = arith.addf %79, %83 : vector<1x128xf32>
    %85 = vector.extract_strided_slice %68 {offsets = [3, 0], sizes = [1, 128], strides = [1, 1]} : vector<8x128xf32> to vector<1x128xf32>
    %c3_80 = arith.constant 3 : index
    %c0_81 = arith.constant 0 : index
    %c0_82 = arith.constant 0 : index
    %86 = vector.load %arg8[%c3_80, %c0_81, %c0_82] : memref<4x128x128xf32, #tpu.memory_space<vmem>>, vector<1x128x128xf32>
    %87 = vector.shape_cast %86 : vector<1x128x128xf32> to vector<128x128xf32>
    %cst_83 = arith.constant dense<0.000000e+00> : vector<1x128xf32>
    %88 = tpu.matmul %85, %87, %cst_83 {dimension_numbers = #tpu.dot_dimension_numbers<[1], [0], [0], [1], [0, 0, 1, 1], [], []>} : vector<1x128xf32>, vector<128x128xf32>, vector<1x128xf32> -> vector<1x128xf32>
    %89 = arith.addf %84, %88 : vector<1x128xf32>
    %c0_84 = arith.constant 0 : index
    %c0_85 = arith.constant 0 : index
    %90 = vector.load %arg9[%c0_84, %c0_85] : memref<1x128xf32, #tpu.memory_space<vmem>>, vector<1x128xf32>
    %91 = arith.addf %89, %90 : vector<1x128xf32>
    %cst_86 = arith.constant 0.000000e+00 : f32
    %92 = vector.broadcast %cst_86 : f32 to vector<1x128xf32>
    %93 = arith.maximumf %91, %92 : vector<1x128xf32>
    %c0_87 = arith.constant 0 : index
    %c0_88 = arith.constant 0 : index
    %94 = vector.load %arg10[%c0_87, %c0_88] : memref<128x128xf32, #tpu.memory_space<vmem>>, vector<128x128xf32>
    %cst_89 = arith.constant dense<0.000000e+00> : vector<1x128xf32>
    %95 = tpu.matmul %93, %94, %cst_89 {dimension_numbers = #tpu.dot_dimension_numbers<[1], [0], [0], [1], [0, 0, 1, 1], [], []>} : vector<1x128xf32>, vector<128x128xf32>, vector<1x128xf32> -> vector<1x128xf32>
    %c0_90 = arith.constant 0 : index
    %c0_91 = arith.constant 0 : index
    %96 = vector.load %arg11[%c0_90, %c0_91] : memref<1x128xf32, #tpu.memory_space<vmem>>, vector<1x128xf32>
    %97 = arith.addf %95, %96 : vector<1x128xf32>
    %c0_92 = arith.constant 0 : index
    %c0_93 = arith.constant 0 : index
    %c0_94 = arith.constant 0 : index
    %98 = vector.load %arg12[%c0_92, %c0_93, %c0_94] : memref<1x1x128xf32, #tpu.memory_space<vmem>>, vector<1x1x128xf32>
    %99 = vector.shape_cast %98 : vector<1x1x128xf32> to vector<1x128xf32>
    %100 = vector.shape_cast %97 : vector<1x128xf32> to vector<1x1x128xf32>
    tpu.vector_store %arg12[%c0_92, %c0_93, %c0_94], %100 {strides = array<i32>} : memref<1x1x128xf32, #tpu.memory_space<vmem>>, vector<1x1x128xf32>,
    return
  }
  func.func @transform_0(%arg0: i32) -> (i32, i32, i32) {
    %c0_i32 = arith.constant 0 : i32
    %c0_i32_0 = arith.constant 0 : i32
    %c0_i32_1 = arith.constant 0 : i32
    return %arg0, %c0_i32, %c0_i32_0 : i32, i32, i32
  }
  func.func @transform_1(%arg0: i32) -> (i32, i32) {
    %c0_i32 = arith.constant 0 : i32
    %c0_i32_0 = arith.constant 0 : i32
    %c0_i32_1 = arith.constant 0 : i32
    return %c0_i32, %c0_i32_0 : i32, i32
  }
  func.func @transform_2(%arg0: i32) -> (i32, i32) {
    %c0_i32 = arith.constant 0 : i32
    %c0_i32_0 = arith.constant 0 : i32
    %c0_i32_1 = arith.constant 0 : i32
    return %c0_i32, %c0_i32_0 : i32, i32
  }
  func.func @transform_3(%arg0: i32) -> (i32, i32, i32) {
    %c0_i32 = arith.constant 0 : i32
    %c0_i32_0 = arith.constant 0 : i32
    %c0_i32_1 = arith.constant 0 : i32
    %c0_i32_2 = arith.constant 0 : i32
    return %c0_i32, %c0_i32_0, %c0_i32_1 : i32, i32, i32
  }
  func.func @transform_4(%arg0: i32) -> (i32, i32) {
    %c0_i32 = arith.constant 0 : i32
    %c0_i32_0 = arith.constant 0 : i32
    %c0_i32_1 = arith.constant 0 : i32
    return %c0_i32, %c0_i32_0 : i32, i32
  }
  func.func @transform_5(%arg0: i32) -> (i32, i32) {
    %c0_i32 = arith.constant 0 : i32
    %c0_i32_0 = arith.constant 0 : i32
    %c0_i32_1 = arith.constant 0 : i32
    return %c0_i32, %c0_i32_0 : i32, i32
  }
  func.func @transform_6(%arg0: i32) -> (i32, i32) {
    %c0_i32 = arith.constant 0 : i32
    %c0_i32_0 = arith.constant 0 : i32
    %c0_i32_1 = arith.constant 0 : i32
    return %c0_i32, %c0_i32_0 : i32, i32
  }
  func.func @transform_7(%arg0: i32) -> (i32, i32, i32) {
    %c0_i32 = arith.constant 0 : i32
    %c0_i32_0 = arith.constant 0 : i32
    %c0_i32_1 = arith.constant 0 : i32
    %c0_i32_2 = arith.constant 0 : i32
    return %c0_i32, %c0_i32_0, %c0_i32_1 : i32, i32, i32
  }
  func.func @transform_8(%arg0: i32) -> (i32, i32) {
    %c0_i32 = arith.constant 0 : i32
    %c0_i32_0 = arith.constant 0 : i32
    %c0_i32_1 = arith.constant 0 : i32
    return %c0_i32, %c0_i32_0 : i32, i32
  }
  func.func @transform_9(%arg0: i32) -> (i32, i32) {
    %c0_i32 = arith.constant 0 : i32
    %c0_i32_0 = arith.constant 0 : i32
    %c0_i32_1 = arith.constant 0 : i32
    return %c0_i32, %c0_i32_0 : i32, i32
  }
  func.func @transform_10(%arg0: i32) -> (i32, i32) {
    %c0_i32 = arith.constant 0 : i32
    %c0_i32_0 = arith.constant 0 : i32
    %c0_i32_1 = arith.constant 0 : i32
    return %c0_i32, %c0_i32_0 : i32, i32
  }
  func.func @transform_11(%arg0: i32) -> (i32, i32, i32) {
    %c0_i32 = arith.constant 0 : i32
    %c0_i32_0 = arith.constant 0 : i32
    %c0_i32_1 = arith.constant 0 : i32
    return %arg0, %c0_i32, %c0_i32_0 : i32, i32, i32
  }
}

</mosaic_0001>

<bundles_post_ra>
// kernel: cnn_forward.1
= control target key start
LH: loop header
LB: loop body
LE: loop exit
PB: predicated region body
PF: predicated region fallthrough
CT: control target
= control target key end

     0   :  { %16 = vsyncpa [#allocation5], 0  ;;  %s5551_s0 = inlined_call_operand.vmem [shape: f32[2,224,128], index: 0, kind: input, shape index: {}]   ;;  %s5552_s1 = inlined_call_operand.vmem [shape: f32[128,128], index: 1, kind: input, shape index: {}]   ;;  %s5553_s2 = inlined_call_operand.vmem [shape: f32[1,128], index: 2, kind: input, shape index: {}]   ;;  %s5554_s3 = inlined_call_operand.vmem [shape: f32[9,128,128], index: 3, kind: input, shape index: {}]   ;;  %s5555_s4 = inlined_call_operand.vmem [shape: f32[1,128], index: 4, kind: input, shape index: {}]   ;;  %s5556_s5 = inlined_call_operand.vmem [shape: f32[56,224], index: 5, kind: input, shape index: {}]   ;;  %s5557_s6 = inlined_call_operand.vmem [shape: f32[8,40], index: 6, kind: input, shape index: {}]   ;;  %s5558_s7 = inlined_call_operand.vmem [shape: f32[4,128,128], index: 7, kind: input, shape index: {}]   ;;  %s5559_s8 = inlined_call_operand.vmem [shape: f32[1,128], index: 8, kind: input, shape index: {}]   ;;  %s5560_s9 = inlined_call_operand.vmem [shape: f32[128,128], index: 9, kind: input, shape index: {}]   ;;  %s5561_s10 = inlined_call_operand.vmem [shape: f32[1,128], index: 10, kind: input, shape index: {}]   ;;  %s5562_s11 = inlined_call_operand.hbm [shape: f32[2,1,128], index: 11, kind: output, shape index: {}]  }
   0x1   :  { %18 = vsyncpa [#allocation5 + $0x1], 0  ;;  %s4306_s17 = smov 0   ;;  %s4308_s18 = smov 0  }
   0x2   :  { %s4310_s19 = smov 0   ;;  %s4312_s20 = smov 0  }
   0x3 LB: > { %s4327_s21 = sadd.s32 4294967295, %s4240_s20   ;;  %s2516_s22 = sadd.s32 4294967294, %s4240_s20   ;;  %s4240_s20 = sphi %s4312_s20, %s5570_s20   ;;  %s4236_s19 = sphi %s4310_s19, %s5569_s19   ;;  %s4232_s18 = sphi %s4308_s18, %s5568_s18   ;;  %s4228_s17 = sphi %s4306_s17, %s5567_s17  }
   0x4   : > { %s4331_s23 = sadd.s32 1, %s4240_s20   ;;  %s267_s24 = sadd.s32 1, %s4236_s19 }
   0x5   : > { %s264_s25 = ssub.s32 %s4240_s20, %s4331_s23  ;;  %p277_p0 = scmp.ne.s32.totalorder %s4236_s19, %s4232_s18 }
   0x6   : > { %p265_p1 = scmp.eq.s32.totalorder %s264_s25, 0  ;;  %p278_p2 = scmp.eq.s32.totalorder %s4327_s21, 1 }
   0x7   : > { %p283_p3 = scmp.ne.s32.totalorder %s4232_s18, %s4228_s17  ;;  %p284_p4 = scmp.eq.s32.totalorder %s2516_s22, 1 }
   0x8   : > { %s4342_s26 = scalar_select %p265_p1, %s4236_s19, %s267_s24  }
   0x9   : > { %p4344_p5 = por %p278_p2, %p277_p0  ;;  %p4348_p6 = por %p284_p4, %p283_p3 }
   0xa   : > { %5563 = sst [smem:[#allocation7_spill]] %s4342_s26  ;;  %p2519_p7 = scmp.ge.s32.totalorder %s4240_s20, 1 }
   0xb   : > { %p340_p8 = scmp.lt.s32.totalorder %s4240_s20, 3 }
   0xd   : > { %p341_p9 = pnand %p2519_p7, %p340_p8 }
   0xe   : > { %v412_v0 = vld [vmem:[%s5552_s1] sm:$0xff] (!%p341_p9)  ;;  %v413_v1 = vld [vmem:[%s5552_s1 + $0x8] sm:$0xff] (!%p341_p9)  ;;  %v414_v2 = vld [vmem:[%s5552_s1 + $0x10] sm:$0xff] (!%p341_p9)  ;;  %p379_p10 = scmp.lt.s32.totalorder (!%p341_p9), %s4327_s21, 1  ;;  %v4242_v52 = vmov (!%p341_p9), 0.0|0.0   ;;  %vm738_vm0 = vcmask (!%p341_p9), 785408  }
   0xf   : > { %344 = sbr.rel (%p341_p9) target bundleno = 1606 (0x646), region = 64  ;;  %v3719_v3 = vpack.c.bf16 (!%p341_p9), %v413_v1, %v412_v0  ;;  %v415_v4 = vld [vmem:[%s5552_s1 + $0x18] sm:$0xff] (!%p341_p9)  ;;  %v416_v6 = vld [vmem:[%s5552_s1 + $0x20] sm:$0xff] (!%p341_p9)  ;;  %v417_v7 = vld [vmem:[%s5552_s1 + $0x28] sm:$0xff] (!%p341_p9)  ;;  %3751 = vmatprep.subr.bf16.mxu1 (!%p341_p9), %v4242_v52  ;;  %vm4243_vm1 = vmmov (!%p341_p9), 0   ;;  %vm1927_vm2 = vcmask (!%p341_p9), 326656  }
  0x10   : > { %v3723_v5 = vpack.c.bf16 (!%p341_p9), %v415_v4, %v414_v2  ;;  %v3727_v8 = vpack.c.bf16 (!%p341_p9), %v417_v7, %v416_v6  ;;  %v418_v9 = vld [vmem:[%s5552_s1 + $0x30] sm:$0xff] (!%p341_p9)  ;;  %v419_v10 = vld [vmem:[%s5552_s1 + $0x38] sm:$0xff] (!%p341_p9)  ;;  %v420_v13 = vld [vmem:[%s5552_s1 + $0x40] sm:$0xff] (!%p341_p9)  ;;  %s377_s16 = sand.u32 (!%p341_p9), 1, %s4232_s18   ;;  %s2707_s25 = sshll.u32 (!%p341_p9), %s4327_s21, 4 }
  0x11   : > { %3720 = vmatprep.subr.bf16.mxu0 (!%p341_p9), %v3719_v3  ;;  %v3731_v12 = vpack.c.bf16 (!%p341_p9), %v419_v10, %v418_v9  ;;  %v421_v14 = vld [vmem:[%s5552_s1 + $0x48] sm:$0xff] (!%p341_p9)  ;;  %v422_v16 = vld [vmem:[%s5552_s1 + $0x50] sm:$0xff] (!%p341_p9)  ;;  %v423_v17 = vld [vmem:[%s5552_s1 + $0x58] sm:$0xff] (!%p341_p9)  ;;  %s378_s29 = scalar_lea.vmem (!%p341_p9), [#allocation4], %s377_s16  ;;  %s5509_s14 = scalar_lea.hbm (!%p341_p9), %s5562_s11, %s2707_s25 }
  0x12   : > { %3722 = vmatpush3.bf16.msra.mxu0 (!%p341_p9), %v3719_v3  ;;  %v3735_v15 = vpack.c.bf16 (!%p341_p9), %v421_v14, %v420_v13  ;;  %v3739_v18 = vpack.c.bf16 (!%p341_p9), %v423_v17, %v422_v16  ;;  %v424_v19 = vld [vmem:[%s5552_s1 + $0x60] sm:$0xff] (!%p341_p9)  ;;  %v425_v20 = vld [vmem:[%s5552_s1 + $0x68] sm:$0xff] (!%p341_p9)  ;;  %v426_v22 = vld [vmem:[%s5552_s1 + $0x70] sm:$0xff] (!%p341_p9)  ;;  %s2461_s30 = sshll.u32 (!%p341_p9), %s378_s29, 4  ;;  %s2449_s15 = scalar_lea.sflag (!%p341_p9), [#allocation5], %s377_s16  ;;  %s5511_s30 = int_to_ptr.vmem [resolvable:$true] %s2461_s30 }
  0x13   : > { %3724 = vmatprep.subr.bf16.mxu0 (!%p341_p9), %v3723_v5  ;;  %v3743_v21 = vpack.c.bf16 (!%p341_p9), %v425_v20, %v424_v19  ;;  %v427_v23 = vld [vmem:[%s5552_s1 + $0x78] sm:$0xff] (!%p341_p9)  ;;  %v697_v53 = vld [vmem:[%s5556_s5 + $0x8] sm:$0xff] (!%p341_p9)  ;;  %v2529_v54 = vld [vmem:[%s5554_s3 + $0x80] sm:$0xff] (!%p341_p9) }
  0x14   : > { %v3747_v24 = vpack.c.bf16 (!%p341_p9), %v427_v23, %v426_v22  ;;  %2522 = vmatprep.mubr.msk.f32.mxu1 (!%p341_p9), %vm738_vm0, %v697_v53  ;;  %v2530_v55 = vld [vmem:[%s5554_s3 + $0x88] sm:$0xff] (!%p341_p9)  ;;  %v2531_v56 = vld [vmem:[%s5554_s3 + $0x90] sm:$0xff] (!%p341_p9)  ;;  %v2532_v58 = vld [vmem:[%s5554_s3 + $0x98] sm:$0xff] (!%p341_p9) }
  0x15   : > { %v3794_v57 = vpack.c.bf16 (!%p341_p9), %v2530_v55, %v2529_v54  ;;  %v3797_v59 = vpack.c.bf16 (!%p341_p9), %v2532_v58, %v2531_v56  ;;  %v2533_v60 = vld [vmem:[%s5554_s3 + $0xa0] sm:$0xff] (!%p341_p9)  ;;  %v2534_v61 = vld [vmem:[%s5554_s3 + $0xa8] sm:$0xff] (!%p341_p9)  ;;  %v2535_v63 = vld [vmem:[%s5554_s3 + $0xb0] sm:$0xff] (!%p341_p9) }
  0x16   : > { %s380_s12 = scalar_select %p379_p10, %s4327_s21, 1  ;;  %3726 = vmatpush3.bf16.msra.mxu0 %v3723_v5  ;;  %v3800_v62 = vpack.c.bf16 %v2534_v61, %v2533_v60  ;;  %v2536_v0 = vld [vmem:[%s5554_s3 + $0xb8] sm:$0xff]  ;;  %v2537_v2 = vld [vmem:[%s5554_s3 + $0xc0] sm:$0xff]  ;;  %v2538_v3 = vld [vmem:[%s5554_s3 + $0xc8] sm:$0xff] }
  0x17   : > { %3728 = vmatprep.subr.bf16.mxu0 %v3727_v8  ;;  %v3803_v1 = vpack.c.bf16 %v2536_v0, %v2535_v63  ;;  %v3806_v4 = vpack.c.bf16 %v2538_v3, %v2537_v2  ;;  %v4481_v5 = vld [vmem:[%s5553_s2] ss:$0 sm:$0xff]  ;;  %s4245_s21 = smov [#allocation4]  }
  0x18   : > { %s4135_s13 = smul.u32 224, %s380_s12  ;;  %s4182_s22 = sshll.u32 %s4245_s21, 4  ;;  %s4183_s22 = int_to_ptr.vmem [resolvable:$false] %s4182_s22 }
  0x19   : > { %s4184_s24 = scalar_lea.vmem %s4183_s22, 32  ;;  %p4185_p0 = scmp.lt.s32.totalorder %s5511_s30, %s4183_s22 }
  0x1a   : > { %s4383_s26 = scalar_lea.vmem %s5551_s0, %s4135_s13  ;;  %3730 = vmatpush3.bf16.msra.mxu0 %v3727_v8  ;;  %s4178_s13 = scalar_lea.vmem %s5511_s30, 16 }
  0x1b   : > { %v384_v11 = vld [vmem:[%s4383_s26] sm:$0xff]  ;;  %3732 = vmatprep.subr.bf16.mxu0 %v3731_v12  ;;  %v385_v25 = vld [vmem:[%s4383_s26 + $0x8] sm:$0xff]  ;;  %v386_v26 = vld [vmem:[%s4383_s26 + $0x10] sm:$0xff]  ;;  %p4179_p11 = scmp.ne.s32.totalorder %s5511_s30, %s4178_s13  ;;  %p4186_p1 = scmp.lt.s32.totalorder %s4184_s24, %s4178_s13 }
  0x1c   : > { %3066 = vmatprep.mubr.f32.mxu0 %v384_v11  ;;  %v387_v27 = vld [vmem:[%s4383_s26 + $0x18] sm:$0xff]  ;;  %v388_v28 = vld [vmem:[%s4383_s26 + $0x20] sm:$0xff]  ;;  %v389_v29 = vld [vmem:[%s4383_s26 + $0x28] sm:$0xff] }
  0x1d   : > { %v390_v30 = vld [vmem:[%s4383_s26 + $0x30] sm:$0xff]  ;;  %v391_v31 = vld [vmem:[%s4383_s26 + $0x38] sm:$0xff]  ;;  %v392_v32 = vld [vmem:[%s4383_s26 + $0x40] sm:$0xff]  ;;  %p4180_p12 = pnand %p4179_p11, %p4344_p5  ;;  %p4187_p2 = por %p4186_p1, %p4185_p0 }
  0x1e   : > { %3734 = vmatpush3.bf16.msra.mxu0 %v3731_v12  ;;  %v393_v33 = vld [vmem:[%s4383_s26 + $0x48] sm:$0xff]  ;;  %v394_v34 = vld [vmem:[%s4383_s26 + $0x50] sm:$0xff]  ;;  %v395_v35 = vld [vmem:[%s4383_s26 + $0x58] sm:$0xff] }
  0x1f   : > { %3736 = vmatprep.subr.bf16.mxu0 %v3735_v15  ;;  %v396_v36 = vld [vmem:[%s4383_s26 + $0x60] sm:$0xff]  ;;  %v397_v37 = vld [vmem:[%s4383_s26 + $0x68] sm:$0xff]  ;;  %v398_v38 = vld [vmem:[%s4383_s26 + $0x70] sm:$0xff]  ;;  %p4181_p13 = pneg %p4180_p12 }
  0x20   : > { %v399_v39 = vld [vmem:[%s4383_s26 + $0x78] sm:$0xff]  ;;  %v400_v40 = vld [vmem:[%s4383_s26 + $0x80] sm:$0xff]  ;;  %v401_v41 = vld [vmem:[%s4383_s26 + $0x88] sm:$0xff] }
  0x21   : > { %v402_v42 = vld [vmem:[%s4383_s26 + $0x90] sm:$0xff]  ;;  %v403_v43 = vld [vmem:[%s4383_s26 + $0x98] sm:$0xff]  ;;  %v404_v44 = vld [vmem:[%s4383_s26 + $0xa0] sm:$0xff]  ;;  %p4188_p3 = pnand %p4187_p2, %p4181_p13 }
  0x22   : > { %3738 = vmatpush3.bf16.msra.mxu0 %v3735_v15  ;;  %v405_v45 = vld [vmem:[%s4383_s26 + $0xa8] sm:$0xff]  ;;  %v406_v46 = vld [vmem:[%s4383_s26 + $0xb0] sm:$0xff]  ;;  %v407_v47 = vld [vmem:[%s4383_s26 + $0xb8] sm:$0xff] }
  0x23   : > { %3740 = vmatprep.subr.bf16.mxu0 %v3739_v18  ;;  %v408_v48 = vld [vmem:[%s4383_s26 + $0xc0] sm:$0xff]  ;;  %v409_v49 = vld [vmem:[%s4383_s26 + $0xc8] sm:$0xff]  ;;  %v410_v50 = vld [vmem:[%s4383_s26 + $0xd0] sm:$0xff] }
  0x24   : > { %v411_v51 = vld [vmem:[%s4383_s26 + $0xd8] sm:$0xff] }
  0x26   : > { %3742 = vmatpush3.bf16.msra.mxu0 %v3739_v18 }
  0x27   : > { %3744 = vmatprep.subr.bf16.mxu0 %v3743_v21 }
  0x2a   : > { %3746 = vmatpush3.bf16.msra.mxu0 %v3743_v21 }
  0x2b   : > { %3748 = vmatprep.subr.bf16.mxu0 %v3747_v24 }
  0x2e   : > { %3750 = vmatpush3.bf16.msra.mxu0 %v3747_v24 }
  0x2f   : > { %3793 = vmatprep.subr.bf16.mxu0 %v4242_v52 }
  0x31   : > { %3067 = vmatmul.mubr.f32.vlgmr.msra.gmra.mrb[0].mxu0 %v385_v25 }
  0x32   : > { %3069 = vmatprep.mubr.f32.mxu0 %v386_v26  ;;  %3795 = vmatpush3.bf16.msra.mxu0 %v3794_v57 }
  0x33   : > { %3796 = vmatprep.subr.bf16.mxu0 %v4242_v52 }
  0x35   : > { %3070 = vmatmul.mubr.f32.gmra.mrb[2].mxu0 %v387_v27 }
  0x36   : > { %3072 = vmatprep.mubr.f32.mxu0 %v388_v28  ;;  %3798 = vmatpush3.bf16.msra.mxu0 %v3797_v59 }
  0x37   : > { %3799 = vmatprep.subr.bf16.mxu0 %v4242_v52 }
  0x39   : > { %3073 = vmatmul.mubr.f32.gmra.mrb[4].mxu0 %v389_v29 }
  0x3a   : > { %3075 = vmatprep.mubr.f32.mxu0 %v390_v30  ;;  %3801 = vmatpush3.bf16.msra.mxu0 %v3800_v62 }
  0x3b   : > { %3802 = vmatprep.subr.bf16.mxu0 %v4242_v52 }
  0x3d   : > { %3076 = vmatmul.mubr.f32.gmra.mrb[6].mxu0 %v391_v31 }
  0x3e   : > { %3078 = vmatprep.mubr.f32.mxu0 %v392_v32  ;;  %3804 = vmatpush3.bf16.msra.mxu0 %v3803_v1 }
  0x3f   : > { %3805 = vmatprep.subr.bf16.mxu0 %v4242_v52 }
  0x41   : > { %3079 = vmatmul.mubr.f32.gmra.mrb[8].mxu0 %v393_v33 }
  0x42   : > { %3081 = vmatprep.mubr.f32.mxu0 %v394_v34  ;;  %3807 = vmatpush3.bf16.msra.mxu0 %v3806_v4 }
  0x43   : > { %3808 = vmatprep.subr.bf16.mxu0 %v4242_v52 }
  0x45   : > { %3082 = vmatmul.mubr.f32.gmra.mrb[10].mxu0 %v395_v35 }
  0x46   : > { %3084 = vmatprep.mubr.f32.mxu0 %v396_v36 }
  0x49   : > { %3085 = vmatmul.mubr.f32.gmra.mrb[12].mxu0 %v397_v37 }
  0x4a   : > { %3087 = vmatprep.mubr.f32.mxu0 %v398_v38 }
  0x4d   : > { %3088 = vmatmul.mubr.f32.gmra.mrb[14].mxu0 %v399_v39 }
  0x4e   : > { %3090 = vmatprep.mubr.f32.mxu0 %v400_v40 }
  0x51   : > { %3091 = vmatmul.mubr.f32.gmra.mrb[16].mxu0 %v401_v41 }
  0x52   : > { %3093 = vmatprep.mubr.f32.mxu0 %v402_v42 }
  0x55   : > { %3094 = vmatmul.mubr.f32.gmra.mrb[18].mxu0 %v403_v43 }
  0x56   : > { %3096 = vmatprep.mubr.f32.mxu0 %v404_v44 }
  0x59   : > { %3097 = vmatmul.mubr.f32.gmra.mrb[20].mxu0 %v405_v45 }
  0x5a   : > { %3099 = vmatprep.mubr.f32.mxu0 %v406_v46 }
  0x5d   : > { %3100 = vmatmul.mubr.f32.gmra.mrb[22].mxu0 %v407_v47 }
  0x5e   : > { %3102 = vmatprep.mubr.f32.mxu0 %v408_v48 }
  0x61   : > { %3103 = vmatmul.mubr.f32.gmra.mrb[24].mxu0 %v409_v49 }
  0x62   : > { %3105 = vmatprep.mubr.f32.mxu0 %v410_v50 }
  0x65   : > { %3106 = vmatmul.mubr.f32.gmra.mrb[26].mxu0 %v411_v51 }
 0x104   : > { %v3068_v6 = vpop.f32.mrb[0].mxu0 }
 0x105   : > { %v507_v7 = vadd.f32 %v3068_v6, %v4481_v5  ;;  %v501_v8 = vpop.f32.mrb[1].mxu0 }
 0x106   : > { %v502_v9 = vadd.f32 %v4481_v5, %v501_v8 }
 0x107   : > { %v641_v10 = vmax.f32 %v507_v7, 0.0 }
 0x108   : > { %v640_v11 = vmax.f32 %v502_v9, 0.0  ;;  %v3071_v12 = vpop.f32.mrb[2].mxu0 }
 0x109   : > { %v517_v13 = vadd.f32 %v3071_v12, %v4481_v5  ;;  %v511_v14 = vpop.f32.mrb[3].mxu0 }
 0x10a   : > { %v512_v15 = vadd.f32 %v4481_v5, %v511_v14  ;;  %v3752_v16 = vpack.c.bf16 %v641_v10, %v640_v11 }
 0x10b   : > { %v643_v17 = vmax.f32 %v517_v13, 0.0 }
 0x10c   : > { %v642_v18 = vmax.f32 %v512_v15, 0.0  ;;  %v3074_v19 = vpop.f32.mrb[4].mxu0  ;;  %3753 = vmatpush1.bf16.msra.mxu1 %v3752_v16 }
 0x10d   : > { %v527_v20 = vadd.f32 %v3074_v19, %v4481_v5  ;;  %v521_v21 = vpop.f32.mrb[5].mxu0  ;;  %3754 = vmatprep.subr.bf16.mxu1 %v4242_v52 }
 0x10e   : > { %v3755_v22 = vpack.c.bf16 %v643_v17, %v642_v18  ;;  %v522_v23 = vadd.f32 %v4481_v5, %v521_v21 }
 0x10f   : > { %v645_v24 = vmax.f32 %v527_v20, 0.0 }
 0x110   : > { %v644_v25 = vmax.f32 %v522_v23, 0.0  ;;  %v3077_v26 = vpop.f32.mrb[6].mxu0  ;;  %3756 = vmatpush1.bf16.msra.mxu1 %v3755_v22 }
 0x111   : > { %v537_v27 = vadd.f32 %v3077_v26, %v4481_v5  ;;  %v531_v28 = vpop.f32.mrb[7].mxu0  ;;  %3757 = vmatprep.subr.bf16.mxu1 %v4242_v52 }
 0x112   : > { %v3758_v29 = vpack.c.bf16 %v645_v24, %v644_v25  ;;  %v532_v30 = vadd.f32 %v4481_v5, %v531_v28 }
 0x113   : > { %v647_v31 = vmax.f32 %v537_v27, 0.0 }
 0x114   : > { %v646_v32 = vmax.f32 %v532_v30, 0.0  ;;  %v3080_v33 = vpop.f32.mrb[8].mxu0  ;;  %3759 = vmatpush1.bf16.msra.mxu1 %v3758_v29 }
 0x115   : > { %v547_v34 = vadd.f32 %v3080_v33, %v4481_v5  ;;  %v541_v35 = vpop.f32.mrb[9].mxu0  ;;  %3760 = vmatprep.subr.bf16.mxu1 %v4242_v52 }
 0x116   : > { %v3761_v36 = vpack.c.bf16 %v647_v31, %v646_v32  ;;  %v542_v37 = vadd.f32 %v4481_v5, %v541_v35 }
 0x117   : > { %v649_v38 = vmax.f32 %v547_v34, 0.0 }
 0x118   : > { %v648_v39 = vmax.f32 %v542_v37, 0.0  ;;  %v3083_v40 = vpop.f32.mrb[10].mxu0  ;;  %3762 = vmatpush1.bf16.msra.mxu1 %v3761_v36 }
 0x119   : > { %v557_v41 = vadd.f32 %v3083_v40, %v4481_v5  ;;  %v551_v42 = vpop.f32.mrb[11].mxu0  ;;  %3763 = vmatprep.subr.bf16.mxu1 %v4242_v52 }
 0x11a   : > { %v3764_v43 = vpack.c.bf16 %v649_v38, %v648_v39  ;;  %v552_v44 = vadd.f32 %v4481_v5, %v551_v42  ;;  %v873_v42 = vld [vmem:[%s5554_s3 + $0x8] sm:$0xff] }
 0x11b   : > { %v651_v45 = vmax.f32 %v557_v41, 0.0  ;;  %v872_v41 = vld [vmem:[%s5554_s3] sm:$0xff] }
 0x11c   : > { %v650_v46 = vmax.f32 %v552_v44, 0.0  ;;  %v3086_v47 = vpop.f32.mrb[12].mxu0  ;;  %3765 = vmatpush1.bf16.msra.mxu1 %v3764_v43  ;;  %v696_v44 = vld [vmem:[%s5556_s5] sm:$0xff] }
 0x11d   : > { %v567_v48 = vadd.f32 %v3086_v47, %v4481_v5  ;;  %v561_v49 = vpop.f32.mrb[13].mxu0  ;;  %3766 = vmatprep.subr.bf16.mxu1 %v4242_v52  ;;  %v875_v47 = vld [vmem:[%s5554_s3 + $0x18] sm:$0xff] }
 0x11e   : > { %v3767_v50 = vpack.c.bf16 %v651_v45, %v650_v46  ;;  %v562_v51 = vadd.f32 %v4481_v5, %v561_v49  ;;  %v699_v45 = vld [vmem:[%s5556_s5 + $0x18] sm:$0xff]  ;;  %v874_v46 = vld [vmem:[%s5554_s3 + $0x10] sm:$0xff] }
 0x11f   : > { %v653_v53 = vmax.f32 %v567_v48, 0.0  ;;  %v698_v48 = vld [vmem:[%s5556_s5 + $0x10] sm:$0xff]  ;;  %v3821_v49 = vpack.c.bf16 %v875_v47, %v874_v46  ;;  %v2548_v46 = vld [vmem:[%s5554_s3 + $0x118] sm:$0xff] }
 0x120   : > { %v652_v54 = vmax.f32 %v562_v51, 0.0  ;;  %v3089_v55 = vpop.f32.mrb[14].mxu0  ;;  %3768 = vmatpush1.bf16.msra.mxu1 %v3767_v50  ;;  %v701_v50 = vld [vmem:[%s5556_s5 + $0x28] sm:$0xff]  ;;  %v876_v51 = vld [vmem:[%s5554_s3 + $0x20] sm:$0xff] }
 0x121   : > { %v577_v56 = vadd.f32 %v3089_v55, %v4481_v5  ;;  %v571_v57 = vpop.f32.mrb[15].mxu0  ;;  %3769 = vmatprep.subr.bf16.mxu1 %v4242_v52 }
 0x122   : > { %v3770_v58 = vpack.c.bf16 %v653_v53, %v652_v54  ;;  %v572_v59 = vadd.f32 %v4481_v5, %v571_v57  ;;  %v877_v53 = vld [vmem:[%s5554_s3 + $0x28] sm:$0xff]  ;;  %v700_v54 = vld [vmem:[%s5556_s5 + $0x20] sm:$0xff]  ;;  %v878_v57 = vld [vmem:[%s5554_s3 + $0x30] sm:$0xff] }
 0x123   : > { %v655_v60 = vmax.f32 %v577_v56, 0.0  ;;  %v3824_v55 = vpack.c.bf16 %v877_v53, %v876_v51  ;;  %v703_v56 = vld [vmem:[%s5556_s5 + $0x38] sm:$0xff]  ;;  %v2570_v51 = vld [vmem:[%s5554_s3 + $0x1c8] sm:$0xff] }
 0x124   : > { %v654_v61 = vmax.f32 %v572_v59, 0.0  ;;  %v3092_v62 = vpop.f32.mrb[16].mxu0  ;;  %3771 = vmatpush1.bf16.msra.mxu1 %v3770_v58  ;;  %v879_v58 = vld [vmem:[%s5554_s3 + $0x38] sm:$0xff]  ;;  %v702_v59 = vld [vmem:[%s5556_s5 + $0x30] sm:$0xff] }
 0x125   : > { %v587_v63 = vadd.f32 %v3092_v62, %v4481_v5  ;;  %v581_v0 = vpop.f32.mrb[17].mxu0  ;;  %3772 = vmatprep.subr.bf16.mxu1 %v4242_v52  ;;  %v880_v62 = vld [vmem:[%s5554_s3 + $0x40] sm:$0xff] }
 0x126   : > { %v3773_v1 = vpack.c.bf16 %v655_v60, %v654_v61  ;;  %v582_v2 = vadd.f32 %v4481_v5, %v581_v0  ;;  %v3827_v60 = vpack.c.bf16 %v879_v58, %v878_v57  ;;  %v705_v61 = vld [vmem:[%s5556_s5 + $0x48] sm:$0xff]  ;;  %v704_v0 = vld [vmem:[%s5556_s5 + $0x40] sm:$0xff] }
 0x127   : > { %v657_v3 = vmax.f32 %v587_v63, 0.0  ;;  %v881_v63 = vld [vmem:[%s5554_s3 + $0x48] sm:$0xff] }
 0x128   : > { %v656_v4 = vmax.f32 %v582_v2, 0.0  ;;  %v3095_v6 = vpop.f32.mrb[18].mxu0  ;;  %3774 = vmatpush1.bf16.msra.mxu1 %v3773_v1  ;;  %v3830_v1 = vpack.c.bf16 %v881_v63, %v880_v62  ;;  %v707_v2 = vld [vmem:[%s5556_s5 + $0x58] sm:$0xff] }
 0x129   : > { %v597_v7 = vadd.f32 %v3095_v6, %v4481_v5  ;;  %v591_v8 = vpop.f32.mrb[19].mxu0  ;;  %3775 = vmatprep.subr.bf16.mxu1 %v4242_v52  ;;  %v706_v6 = vld [vmem:[%s5556_s5 + $0x50] sm:$0xff] }
 0x12a   : > { %v3776_v9 = vpack.c.bf16 %v657_v3, %v656_v4  ;;  %v592_v10 = vadd.f32 %v4481_v5, %v591_v8  ;;  %v882_v3 = vld [vmem:[%s5554_s3 + $0x50] sm:$0xff]  ;;  %v883_v4 = vld [vmem:[%s5554_s3 + $0x58] sm:$0xff]  ;;  %v709_v8 = vld [vmem:[%s5556_s5 + $0x68] sm:$0xff] }
 0x12b   : > { %v659_v11 = vmax.f32 %v597_v7, 0.0  ;;  %v3833_v7 = vpack.c.bf16 %v883_v4, %v882_v3 }
 0x12c   : > { %v658_v12 = vmax.f32 %v592_v10, 0.0  ;;  %v3098_v13 = vpop.f32.mrb[20].mxu0  ;;  %3777 = vmatpush1.bf16.msra.mxu1 %v3776_v9  ;;  %v708_v9 = vld [vmem:[%s5556_s5 + $0x60] sm:$0xff] }
 0x12d   : > { %v607_v14 = vadd.f32 %v3098_v13, %v4481_v5  ;;  %v601_v15 = vpop.f32.mrb[21].mxu0  ;;  %3778 = vmatprep.subr.bf16.mxu1 %v4242_v52  ;;  %v884_v10 = vld [vmem:[%s5554_s3 + $0x60] sm:$0xff]  ;;  %v886_v13 = vld [vmem:[%s5554_s3 + $0x70] sm:$0xff] }
 0x12e   : > { %v3779_v16 = vpack.c.bf16 %v659_v11, %v658_v12  ;;  %v602_v17 = vadd.f32 %v4481_v5, %v601_v15  ;;  %v885_v11 = vld [vmem:[%s5554_s3 + $0x68] sm:$0xff] }
 0x12f   : > { %v661_v18 = vmax.f32 %v607_v14, 0.0  ;;  %v3836_v12 = vpack.c.bf16 %v885_v11, %v884_v10  ;;  %v887_v14 = vld [vmem:[%s5554_s3 + $0x78] sm:$0xff]  ;;  %v2553_v10 = vld [vmem:[%s5554_s3 + $0x140] sm:$0xff]  ;;  %v2554_v11 = vld [vmem:[%s5554_s3 + $0x148] sm:$0xff] }
 0x130   : > { %v660_v19 = vmax.f32 %v602_v17, 0.0  ;;  %v3101_v20 = vpop.f32.mrb[22].mxu0  ;;  %3780 = vmatpush1.bf16.msra.mxu1 %v3779_v16  ;;  %v3839_v15 = vpack.c.bf16 %v887_v14, %v886_v13  ;;  %v2539_v16 = vld [vmem:[%s5554_s3 + $0xd0] sm:$0xff]  ;;  %v2540_v17 = vld [vmem:[%s5554_s3 + $0xd8] sm:$0xff] }
 0x131   : > { %v617_v21 = vadd.f32 %v3101_v20, %v4481_v5  ;;  %v611_v22 = vpop.f32.mrb[23].mxu0  ;;  %3781 = vmatprep.subr.bf16.mxu1 %v4242_v52  ;;  %v2541_v20 = vld [vmem:[%s5554_s3 + $0xe0] sm:$0xff] }
 0x132   : > { %v3782_v23 = vpack.c.bf16 %v661_v18, %v660_v19  ;;  %v612_v24 = vadd.f32 %v4481_v5, %v611_v22  ;;  %v3809_v18 = vpack.c.bf16 %v2540_v17, %v2539_v16  ;;  %v4244_v19 = vmov 0.0   ;;  %v2576_v16 = vld [vmem:[%s5554_s3 + $0x1f8] sm:$0xff] }
 0x133   : > { %v663_v25 = vmax.f32 %v617_v21, 0.0  ;;  %3140 = vmatprep.mubr.msk.f32.mxu0 %vm4243_vm1, %v4244_v19  ;;  %v2542_v21 = vld [vmem:[%s5554_s3 + $0xe8] sm:$0xff] }
 0x134   : > { %v662_v26 = vmax.f32 %v612_v24, 0.0  ;;  %v3104_v27 = vpop.f32.mrb[24].mxu0  ;;  %3783 = vmatpush1.bf16.msra.mxu1 %v3782_v23  ;;  %3810 = vmatpush3.bf16.msra.mxu0 %v3809_v18  ;;  %v3812_v22 = vpack.c.bf16 %v2542_v21, %v2541_v20  ;;  %v2543_v23 = vld [vmem:[%s5554_s3 + $0xf0] sm:$0xff]  ;;  %v2544_v24 = vld [vmem:[%s5554_s3 + $0xf8] sm:$0xff]  ;;  %v3854_v18 = vpack.c.bf16 %v2554_v11, %v2553_v10 }
 0x135   : > { %v627_v28 = vadd.f32 %v3104_v27, %v4481_v5  ;;  %v621_v29 = vpop.f32.mrb[25].mxu0  ;;  %3784 = vmatprep.subr.bf16.mxu1 %v4242_v52  ;;  %3811 = vmatprep.subr.bf16.mxu0 %v4242_v52  ;;  %v2562_v27 = vld [vmem:[%s5554_s3 + $0x188] sm:$0xff]  ;;  %v2555_v20 = vld [vmem:[%s5554_s3 + $0x150] sm:$0xff]  ;;  %v2556_v21 = vld [vmem:[%s5554_s3 + $0x158] sm:$0xff] }
 0x136   : > { %v3785_v30 = vpack.c.bf16 %v663_v25, %v662_v26  ;;  %v622_v31 = vadd.f32 %v4481_v5, %v621_v29  ;;  %v3815_v25 = vpack.c.bf16 %v2544_v24, %v2543_v23  ;;  %v2561_v26 = vld [vmem:[%s5554_s3 + $0x180] sm:$0xff]  ;;  %v2563_v29 = vld [vmem:[%s5554_s3 + $0x190] sm:$0xff] }
 0x137   : > { %v665_v32 = vmax.f32 %v627_v28, 0.0  ;;  %v3866_v28 = vpack.c.bf16 %v2562_v27, %v2561_v26  ;;  %v2593_v24 = vld [vmem:[%s5554_s3 + $0x280] sm:$0xff]  ;;  %v3857_v26 = vpack.c.bf16 %v2556_v21, %v2555_v20 }
 0x138   : > { %v664_v33 = vmax.f32 %v622_v31, 0.0  ;;  %v3107_v34 = vpop.f32.mrb[26].mxu0  ;;  %3786 = vmatpush1.bf16.msra.mxu1 %v3785_v30  ;;  %3813 = vmatpush3.bf16.msra.mxu0 %v3812_v22  ;;  %v2564_v30 = vld [vmem:[%s5554_s3 + $0x198] sm:$0xff]  ;;  %v2557_v27 = vld [vmem:[%s5554_s3 + $0x160] sm:$0xff] }
 0x139   : > { %v637_v35 = vadd.f32 %v3107_v34, %v4481_v5  ;;  %v631_v36 = vpop.f32.mrb[27].mxu0  ;;  %3787 = vmatprep.subr.bf16.mxu1 %v4242_v52  ;;  %3814 = vmatprep.subr.bf16.mxu0 %v4242_v52  ;;  %v2565_v34 = vld [vmem:[%s5554_s3 + $0x1a0] sm:$0xff] }
 0x13a   : > { %v3788_v37 = vpack.c.bf16 %v665_v32, %v664_v33  ;;  %v632_v38 = vadd.f32 %v4481_v5, %v631_v36  ;;  %v3818_v5 = vpack.c.bf16 %v873_v42, %v872_v41  ;;  %v3869_v33 = vpack.c.bf16 %v2564_v30, %v2563_v29  ;;  %v2567_v42 = vld [vmem:[%s5554_s3 + $0x1b0] sm:$0xff] }
 0x13b   : > { %v667_v39 = vmax.f32 %v637_v35, 0.0  ;;  %v2566_v35 = vld [vmem:[%s5554_s3 + $0x1a8] sm:$0xff]  ;;  %v2595_v30 = vld [vmem:[%s5554_s3 + $0x290] sm:$0xff] }
 0x13c   : > { %v666_v40 = vmax.f32 %v632_v38, 0.0  ;;  %3789 = vmatpush1.bf16.msra.mxu1 %v3788_v37  ;;  %3816 = vmatpush3.bf16.msra.mxu0 %v3815_v25  ;;  %v3872_v38 = vpack.c.bf16 %v2566_v35, %v2565_v34  ;;  %v2594_v25 = vld [vmem:[%s5554_s3 + $0x288] sm:$0xff]  ;;  %v2559_v34 = vld [vmem:[%s5554_s3 + $0x170] sm:$0xff]  ;;  %v2560_v35 = vld [vmem:[%s5554_s3 + $0x178] sm:$0xff] }
 0x13d   : > { %3790 = vmatprep.subr.bf16.mxu1 %v4242_v52  ;;  %3841 = vmatprep.subr.bf16.mxu0 %v4242_v52  ;;  %v3914_v29 = vpack.c.bf16 %v2594_v25, %v2593_v24  ;;  %v2608_v24 = vld [vmem:[%s5554_s3 + $0x2f8] sm:$0xff] }
 0x13e   : > { %v3791_v43 = vpack.c.bf16 %v667_v39, %v666_v40  ;;  %v2545_v39 = vld [vmem:[%s5554_s3 + $0x100] sm:$0xff]  ;;  %v2546_v40 = vld [vmem:[%s5554_s3 + $0x108] sm:$0xff] }
 0x140   : > { %3792 = vmatpush1.bf16.msra.mxu1 %v3791_v43  ;;  %v2568_v43 = vld [vmem:[%s5554_s3 + $0x1b8] sm:$0xff] }
 0x141   : > { %3817 = vmatprep.subr.bf16.mxu1 %v4242_v52  ;;  %v3875_v47 = vpack.c.bf16 %v2568_v43, %v2567_v42  ;;  %v3863_v42 = vpack.c.bf16 %v2560_v35, %v2559_v34  ;;  %v2577_v43 = vld [vmem:[%s5554_s3 + $0x200] sm:$0xff]  ;;  %v2590_v34 = vld [vmem:[%s5554_s3 + $0x268] sm:$0xff] }
 0x143   : > { %825 = vmatmul.mubr.f32.vlgmr.msra.gmra.mrb[0].mxu1 %v696_v44 }
 0x144   : > { %2523 = vmatprep.mubr.msk.f32.mxu1 %vm738_vm0, %v699_v45  ;;  %3819 = vmatpush3.bf16.msra.mxu1 %v3818_v5  ;;  %v3842_v5 = vpack.c.bf16 %v2546_v40, %v2545_v39  ;;  %v2547_v45 = vld [vmem:[%s5554_s3 + $0x110] sm:$0xff]  ;;  %v2598_v39 = vld [vmem:[%s5554_s3 + $0x2a8] sm:$0xff] }
 0x145   : > { %3820 = vmatprep.subr.bf16.mxu1 %v4242_v52 }
 0x147   : > { %830 = vmatmul.mubr.f32.gmra.mrb[2].mxu1 %v698_v48 }
 0x148   : > { %2524 = vmatprep.mubr.msk.f32.mxu1 %vm738_vm0, %v701_v50  ;;  %3822 = vmatpush3.bf16.msra.mxu1 %v3821_v49  ;;  %v2569_v50 = vld [vmem:[%s5554_s3 + $0x1c0] sm:$0xff] }
 0x149   : > { %3823 = vmatprep.subr.bf16.mxu1 %v4242_v52  ;;  %v3878_v57 = vpack.c.bf16 %v2570_v51, %v2569_v50  ;;  %v2579_v50 = vld [vmem:[%s5554_s3 + $0x210] sm:$0xff]  ;;  %v2580_v51 = vld [vmem:[%s5554_s3 + $0x218] sm:$0xff] }
 0x14b   : > { %835 = vmatmul.mubr.f32.gmra.mrb[4].mxu1 %v700_v54  ;;  %v3845_v54 = vpack.c.bf16 %v2548_v46, %v2547_v45  ;;  %v2599_v46 = vld [vmem:[%s5554_s3 + $0x2b0] sm:$0xff] }
 0x14c   : > { %2525 = vmatprep.mubr.msk.f32.mxu1 %vm738_vm0, %v703_v56  ;;  %3825 = vmatpush3.bf16.msra.mxu1 %v3824_v55  ;;  %v2549_v55 = vld [vmem:[%s5554_s3 + $0x120] sm:$0xff]  ;;  %v2550_v56 = vld [vmem:[%s5554_s3 + $0x128] sm:$0xff] }
 0x14d   : > { %3826 = vmatprep.subr.bf16.mxu1 %v4242_v52  ;;  %v3848_v63 = vpack.c.bf16 %v2550_v56, %v2549_v55  ;;  %v2601_v55 = vld [vmem:[%s5554_s3 + $0x2c0] sm:$0xff]  ;;  %v2602_v56 = vld [vmem:[%s5554_s3 + $0x2c8] sm:$0xff] }
 0x14f   : > { %840 = vmatmul.mubr.f32.gmra.mrb[6].mxu1 %v702_v59 }
 0x150   : > { %2526 = vmatprep.mubr.msk.f32.mxu1 %vm738_vm0, %v705_v61  ;;  %3828 = vmatpush3.bf16.msra.mxu1 %v3827_v60  ;;  %v2571_v60 = vld [vmem:[%s5554_s3 + $0x1d0] sm:$0xff]  ;;  %v2572_v61 = vld [vmem:[%s5554_s3 + $0x1d8] sm:$0xff] }
 0x151   : > { %3829 = vmatprep.subr.bf16.mxu1 %v4242_v52 }
 0x153   : > { %845 = vmatmul.mubr.f32.gmra.mrb[8].mxu1 %v704_v0  ;;  %v2551_v0 = vld [vmem:[%s5554_s3 + $0x130] sm:$0xff] }
 0x154   : > { %2527 = vmatprep.mubr.msk.f32.mxu1 %vm738_vm0, %v707_v2  ;;  %3831 = vmatpush3.bf16.msra.mxu1 %v3830_v1  ;;  %v2552_v1 = vld [vmem:[%s5554_s3 + $0x138] sm:$0xff]  ;;  %v3881_v2 = vpack.c.bf16 %v2572_v61, %v2571_v60  ;;  %v2581_v61 = vld [vmem:[%s5554_s3 + $0x220] sm:$0xff] }
 0x155   : > { %3832 = vmatprep.subr.bf16.mxu1 %v4242_v52 }
 0x157   : > { %850 = vmatmul.mubr.f32.gmra.mrb[10].mxu1 %v706_v6  ;;  %v2573_v6 = vld [vmem:[%s5554_s3 + $0x1e0] sm:$0xff] }
 0x158   : > { %2528 = vmatprep.mubr.msk.f32.mxu1 %vm738_vm0, %v709_v8  ;;  %3834 = vmatpush3.bf16.msra.mxu1 %v3833_v7  ;;  %v2574_v7 = vld [vmem:[%s5554_s3 + $0x1e8] sm:$0xff] }
 0x159   : > { %3835 = vmatprep.subr.bf16.mxu1 %v4242_v52 }
 0x15b   : > { %855 = vmatmul.mubr.f32.gmra.mrb[12].mxu1 %v708_v9  ;;  %v3851_v9 = vpack.c.bf16 %v2552_v1, %v2551_v0  ;;  %v3926_v0 = vpack.c.bf16 %v2602_v56, %v2601_v55  ;;  %v2603_v1 = vld [vmem:[%s5554_s3 + $0x2d0] sm:$0xff]  ;;  %v2612_v55 = vld [vmem:[%s5554_s3 + $0x318] sm:$0xff] }
 0x15c   : > { %3837 = vmatpush3.bf16.msra.mxu1 %v3836_v12  ;;  %3187 = vmatprep.mubr.msk.f32.mxu1 %vm4243_vm1, %v4244_v19  ;;  %v3884_v12 = vpack.c.bf16 %v2574_v7, %v2573_v6 }
 0x15d   : > { %3838 = vmatprep.subr.bf16.mxu1 %v4242_v52 }
 0x160   : > { %3840 = vmatpush3.bf16.msra.mxu1 %v3839_v15  ;;  %v2575_v15 = vld [vmem:[%s5554_s3 + $0x1f0] sm:$0xff] }
 0x161   : > { %3865 = vmatprep.subr.bf16.mxu1 %v4242_v52  ;;  %v3887_v22 = vpack.c.bf16 %v2576_v16, %v2575_v15  ;;  %v2606_v15 = vld [vmem:[%s5554_s3 + $0x2e8] sm:$0xff] }
 0x216   : > { %v826_v31 = vpop.f32.mrb[0].mxu1 }
 0x217   : > { %860 = vst [vmem:[#allocation3] sm:$0xff] %v826_v31  ;;  %v828_v32 = vpop.f32.mrb[1].mxu1  ;;  %3188 = vmatmul.mubr.f32.vlgmr.msra.gmra.mrb[14].mxu1 %v826_v31  ;;  %v2596_v31 = vld [vmem:[%s5554_s3 + $0x298] sm:$0xff] }
 0x218   : > { %3867 = vmatpush3.bf16.msra.mxu1 %v3866_v28  ;;  %3190 = vmatprep.mubr.msk.f32.mxu1 %vm4243_vm1, %v4244_v19  ;;  %v2558_v28 = vld [vmem:[%s5554_s3 + $0x168] sm:$0xff] }
 0x219   : > { %3868 = vmatprep.subr.bf16.mxu1 %v4242_v52 }
 0x21a   : > { %v4672_v36 = vpop.f32.mrb[2].mxu1 }
 0x21b   : > { %861 = vst [vmem:[#allocation3 + $0x8] sm:$0xff] %v4672_v36  ;;  %v833_v37 = vpop.f32.mrb[3].mxu1  ;;  %3191 = vmatmul.mubr.f32.gmra.mrb[16].mxu1 %v4672_v36 }
 0x21c   : > { %3870 = vmatpush3.bf16.msra.mxu1 %v3869_v33  ;;  %3193 = vmatprep.mubr.msk.f32.mxu1 %vm4243_vm1, %v4244_v19  ;;  %v3860_v33 = vpack.c.bf16 %v2558_v28, %v2557_v27  ;;  %v3917_v37 = vpack.c.bf16 %v2596_v31, %v2595_v30  ;;  %v2588_v27 = vld [vmem:[%s5554_s3 + $0x258] sm:$0xff]  ;;  %v2625_v30 = vld [vmem:[%s5554_s3 + $0x380] sm:$0xff]  ;;  %v2626_v31 = vld [vmem:[%s5554_s3 + $0x388] sm:$0xff] }
 0x21d   : > { %3871 = vmatprep.subr.bf16.mxu1 %v4242_v52  ;;  %v3962_v35 = vpack.c.bf16 %v2626_v31, %v2625_v30  ;;  %v2623_v30 = vld [vmem:[%s5554_s3 + $0x370] sm:$0xff]  ;;  %v2624_v31 = vld [vmem:[%s5554_s3 + $0x378] sm:$0xff] }
 0x21e   : > { %v4685_v41 = vpop.f32.mrb[4].mxu1 }
 0x21f   : > { %862 = vst [vmem:[#allocation3 + $0x10] sm:$0xff] %v4685_v41  ;;  %v838_v44 = vpop.f32.mrb[5].mxu1  ;;  %3194 = vmatmul.mubr.f32.gmra.mrb[18].mxu1 %v4685_v41 }
 0x220   : > { %3873 = vmatpush3.bf16.msra.mxu1 %v3872_v38  ;;  %3196 = vmatprep.mubr.msk.f32.mxu1 %vm4243_vm1, %v4244_v19  ;;  %v2597_v38 = vld [vmem:[%s5554_s3 + $0x2a0] sm:$0xff]  ;;  %v2578_v44 = vld [vmem:[%s5554_s3 + $0x208] sm:$0xff] }
 0x221   : > { %3874 = vmatprep.subr.bf16.mxu1 %v4242_v52 }
 0x222   : > { %v888_v48 = vld [vmem:[#allocation3 + $0x1] sm:$0xff]  ;;  %v4704_v49 = vpop.f32.mrb[6].mxu1 }
 0x223   : > { %3141 = vmatmul.mubr.f32.vlgmr.msra.gmra.mrb[28].mxu0 %v888_v48  ;;  %863 = vst [vmem:[#allocation3 + $0x18] sm:$0xff] %v4704_v49  ;;  %v843_v53 = vpop.f32.mrb[7].mxu1  ;;  %3197 = vmatmul.mubr.f32.gmra.mrb[20].mxu1 %v4704_v49  ;;  %v1207_v32 = vld [vmem:[#allocation3 + $0x7] sm:$0xff]  ;;  %v3890_v48 = vpack.c.bf16 %v2578_v44, %v2577_v43  ;;  %v2592_v43 = vld [vmem:[%s5554_s3 + $0x278] sm:$0xff] }
 0x224   : > { %3843 = vmatpush3.bf16.msra.mxu0 %v3842_v5  ;;  %3143 = vmatprep.mubr.msk.f32.mxu0 %vm4243_vm1, %v4244_v19  ;;  %v3920_v5 = vpack.c.bf16 %v2598_v39, %v2597_v38  ;;  %v1090_v53 = vld [vmem:[#allocation3 + $0x2] sm:$0xff]  ;;  %v2628_v38 = vld [vmem:[%s5554_s3 + $0x398] sm:$0xff] }
 0x225   : > { %3844 = vmatprep.subr.bf16.mxu0 %v4242_v52  ;;  %3876 = vmatpush3.bf16.msra.mxu1 %v3875_v47  ;;  %v2600_v47 = vld [vmem:[%s5554_s3 + $0x2b8] sm:$0xff] }
 0x226   : > { %v4723_v58 = vld [vmem:[#allocation3 + $0x9] sm:$0xff]  ;;  %v4725_v59 = vpop.f32.mrb[8].mxu1  ;;  %3877 = vmatprep.subr.bf16.mxu1 %v4242_v52  ;;  %3199 = vmatprep.mubr.msk.f32.mxu1 %vm4243_vm1, %v4244_v19 }
 0x227   : > { %3144 = vmatmul.mubr.f32.gmra.mrb[30].mxu0 %v4723_v58  ;;  %864 = vst [vmem:[#allocation3 + $0x20] sm:$0xff] %v4725_v59  ;;  %v848_v62 = vpop.f32.mrb[9].mxu1  ;;  %3200 = vmatmul.mubr.f32.gmra.mrb[22].mxu1 %v4725_v59  ;;  %v4836_v40 = vld [vmem:[#allocation3 + $0xf] sm:$0xff] }
 0x228   : > { %3846 = vmatpush3.bf16.msra.mxu0 %v3845_v54  ;;  %3146 = vmatprep.mubr.msk.f32.mxu0 %vm4243_vm1, %v4244_v19  ;;  %v3923_v54 = vpack.c.bf16 %v2600_v47, %v2599_v46  ;;  %v2582_v62 = vld [vmem:[%s5554_s3 + $0x228] sm:$0xff]  ;;  %v2609_v47 = vld [vmem:[%s5554_s3 + $0x300] sm:$0xff] }
 0x229   : > { %3847 = vmatprep.subr.bf16.mxu0 %v4242_v52  ;;  %3879 = vmatpush3.bf16.msra.mxu1 %v3878_v57  ;;  %v3893_v57 = vpack.c.bf16 %v2580_v51, %v2579_v50  ;;  %v3896_v6 = vpack.c.bf16 %v2582_v62, %v2581_v61  ;;  %v2631_v51 = vld [vmem:[%s5554_s3 + $0x3b0] sm:$0xff]  ;;  %v2614_v62 = vld [vmem:[%s5554_s3 + $0x328] sm:$0xff] }
 0x22a   : > { %v4748_v3 = vpop.f32.mrb[10].mxu1  ;;  %v4750_v4 = vld [vmem:[#allocation3 + $0x11] sm:$0xff]  ;;  %3880 = vmatprep.subr.bf16.mxu1 %v4242_v52  ;;  %3281 = vmatprep.mubr.msk.f32.mxu1 %vm4243_vm1, %v4244_v19 }
 0x22b   : > { %865 = vst [vmem:[#allocation3 + $0x28] sm:$0xff] %v4748_v3  ;;  %3147 = vmatmul.mubr.f32.gmra.mrb[32].mxu0 %v4750_v4  ;;  %v853_v8 = vpop.f32.mrb[11].mxu1  ;;  %v4849_v45 = vld [vmem:[#allocation3 + $0x17] sm:$0xff] }
 0x22c   : > { %3849 = vmatpush3.bf16.msra.mxu0 %v3848_v63  ;;  %3149 = vmatprep.mubr.msk.f32.mxu0 %vm4243_vm1, %v4244_v19  ;;  %v1091_v63 = vld [vmem:[#allocation3 + $0xa] sm:$0xff]  ;;  %v1092_v10 = vld [vmem:[#allocation3 + $0x12] sm:$0xff] }
 0x22d   : > { %3850 = vmatprep.subr.bf16.mxu0 %v4242_v52  ;;  %3882 = vmatpush3.bf16.msra.mxu1 %v3881_v2  ;;  %v2604_v2 = vld [vmem:[%s5554_s3 + $0x2d8] sm:$0xff]  ;;  %v2583_v8 = vld [vmem:[%s5554_s3 + $0x230] sm:$0xff] }
 0x22e   : > { %v4772_v13 = vpop.f32.mrb[12].mxu1  ;;  %v4774_v14 = vld [vmem:[#allocation3 + $0x19] sm:$0xff]  ;;  %3883 = vmatprep.subr.bf16.mxu1 %v4242_v52  ;;  %v3929_v11 = vpack.c.bf16 %v2604_v2, %v2603_v1 }
 0x22f   : > { %866 = vst [vmem:[#allocation3 + $0x30] sm:$0xff] %v4772_v13  ;;  %3150 = vmatmul.mubr.f32.gmra.mrb[34].mxu0 %v4774_v14  ;;  %v858_v17 = vpop.f32.mrb[13].mxu1  ;;  %v4876_v60 = vld [vmem:[#allocation3 + $0x1f] sm:$0xff] }
 0x230   : > { %3852 = vmatpush3.bf16.msra.mxu0 %v3851_v9  ;;  %3152 = vmatprep.mubr.msk.f32.mxu0 %vm4243_vm1, %v4244_v19  ;;  %v2584_v9 = vld [vmem:[%s5554_s3 + $0x238] sm:$0xff]  ;;  %v2585_v17 = vld [vmem:[%s5554_s3 + $0x240] sm:$0xff] }
 0x231   : > { %3853 = vmatprep.subr.bf16.mxu0 %v4242_v52  ;;  %3885 = vmatpush3.bf16.msra.mxu1 %v3884_v12  ;;  %v2605_v12 = vld [vmem:[%s5554_s3 + $0x2e0] sm:$0xff]  ;;  %v3899_v16 = vpack.c.bf16 %v2584_v9, %v2583_v8  ;;  %v2616_v8 = vld [vmem:[%s5554_s3 + $0x338] sm:$0xff] }
 0x232   : > { %v4794_v23 = vld [vmem:[#allocation3 + $0x21] sm:$0xff]  ;;  %3886 = vmatprep.subr.bf16.mxu1 %v4242_v52  ;;  %v3932_v21 = vpack.c.bf16 %v2606_v15, %v2605_v12 }
 0x233   : > { %3153 = vmatmul.mubr.f32.gmra.mrb[36].mxu0 %v4794_v23  ;;  %v4897_v7 = vld [vmem:[#allocation3 + $0x27] sm:$0xff]  ;;  %v1093_v20 = vld [vmem:[#allocation3 + $0x1a] sm:$0xff] }
 0x234   : > { %3855 = vmatpush3.bf16.msra.mxu0 %v3854_v18  ;;  %3234 = vmatprep.mubr.msk.f32.mxu0 %vm4243_vm1, %v4244_v19  ;;  %v2586_v18 = vld [vmem:[%s5554_s3 + $0x248] sm:$0xff]  ;;  %v2617_v15 = vld [vmem:[%s5554_s3 + $0x340] sm:$0xff] }
 0x235   : > { %3856 = vmatprep.subr.bf16.mxu0 %v4242_v52  ;;  %3888 = vmatpush3.bf16.msra.mxu1 %v3887_v22  ;;  %v2607_v22 = vld [vmem:[%s5554_s3 + $0x2f0] sm:$0xff]  ;;  %v3902_v25 = vpack.c.bf16 %v2586_v18, %v2585_v17  ;;  %v1094_v28 = vld [vmem:[#allocation3 + $0x22] sm:$0xff] }
 0x236   : > { %3913 = vmatprep.subr.bf16.mxu1 %v4242_v52  ;;  %v1445_v2 = vld [vmem:[#allocation3 + $0x29] sm:$0xff] }
 0x237   : > { %v2639_v18 = vld [vmem:[%s5554_s3 + $0x3f0] sm:$0xff] }
 0x238   : > { %3858 = vmatpush3.bf16.msra.mxu0 %v3857_v26  ;;  %3282 = vmatmul.mubr.f32.vlgmr.msra.gmra.mrb[24].mxu1 %v1207_v32  ;;  %v2587_v26 = vld [vmem:[%s5554_s3 + $0x250] sm:$0xff] }
 0x239   : > { %3859 = vmatprep.subr.bf16.mxu0 %v4242_v52  ;;  %3915 = vmatpush3.bf16.msra.mxu1 %v3914_v29  ;;  %v3935_v29 = vpack.c.bf16 %v2608_v24, %v2607_v22  ;;  %v3905_v32 = vpack.c.bf16 %v2588_v27, %v2587_v26  ;;  %v2619_v22 = vld [vmem:[%s5554_s3 + $0x350] sm:$0xff]  ;;  %v2620_v24 = vld [vmem:[%s5554_s3 + $0x358] sm:$0xff]  ;;  %v2621_v27 = vld [vmem:[%s5554_s3 + $0x360] sm:$0xff] }
 0x23a   : > { %3284 = vmatprep.mubr.msk.f32.mxu1 %vm4243_vm1, %v4244_v19  ;;  %3916 = vmatprep.subr.bf16.mxu1 %v4242_v52  ;;  %v3953_v26 = vpack.c.bf16 %v2620_v24, %v2619_v22 }
 0x23c   : > { %3861 = vmatpush3.bf16.msra.mxu0 %v3860_v33  ;;  %3285 = vmatmul.mubr.f32.gmra.mrb[26].mxu1 %v4836_v40  ;;  %v2589_v33 = vld [vmem:[%s5554_s3 + $0x260] sm:$0xff] }
 0x23d   : > { %3862 = vmatprep.subr.bf16.mxu0 %v4242_v52  ;;  %3918 = vmatpush3.bf16.msra.mxu1 %v3917_v37  ;;  %v2627_v37 = vld [vmem:[%s5554_s3 + $0x390] sm:$0xff]  ;;  %v3908_v39 = vpack.c.bf16 %v2590_v34, %v2589_v33  ;;  %v2642_v33 = vld [vmem:[%s5554_s3 + $0x408] sm:$0xff] }
 0x23e   : > { %3287 = vmatprep.mubr.msk.f32.mxu1 %vm4243_vm1, %v4244_v19  ;;  %3919 = vmatprep.subr.bf16.mxu1 %v4242_v52  ;;  %v3965_v44 = vpack.c.bf16 %v2628_v38, %v2627_v37  ;;  %v1558_v37 = vld [vmem:[#allocation3 + $0xe] sm:$0xff] }
 0x240   : > { %3864 = vmatpush3.bf16.msra.mxu0 %v3863_v42  ;;  %3288 = vmatmul.mubr.f32.gmra.mrb[28].mxu1 %v4849_v45  ;;  %v2591_v42 = vld [vmem:[%s5554_s3 + $0x270] sm:$0xff] }
 0x241   : > { %3889 = vmatprep.subr.bf16.mxu0 %v4242_v52  ;;  %3921 = vmatpush3.bf16.msra.mxu1 %v3920_v5  ;;  %v2629_v5 = vld [vmem:[%s5554_s3 + $0x3a0] sm:$0xff]  ;;  %v3911_v46 = vpack.c.bf16 %v2592_v43, %v2591_v42  ;;  %v1559_v42 = vld [vmem:[#allocation3 + $0x16] sm:$0xff] }
 0x242   : > { %3290 = vmatprep.mubr.msk.f32.mxu1 %vm4243_vm1, %v4244_v19  ;;  %3922 = vmatprep.subr.bf16.mxu1 %v4242_v52 }
 0x243   : > { %3235 = vmatmul.mubr.f32.vlgmr.msra.gmra.mrb[38].mxu0 %v1090_v53 }
 0x244   : > { %3891 = vmatpush3.bf16.msra.mxu0 %v3890_v48  ;;  %3237 = vmatprep.mubr.msk.f32.mxu0 %vm4243_vm1, %v4244_v19  ;;  %v2610_v48 = vld [vmem:[%s5554_s3 + $0x308] sm:$0xff] }
 0x245   : > { %3892 = vmatprep.subr.bf16.mxu0 %v4242_v52  ;;  %3291 = vmatmul.mubr.f32.gmra.mrb[30].mxu1 %v4876_v60  ;;  %v3938_v53 = vpack.c.bf16 %v2610_v48, %v2609_v47  ;;  %v2649_v47 = vld [vmem:[%s5554_s3 + $0x440] sm:$0xff]  ;;  %v2650_v48 = vld [vmem:[%s5554_s3 + $0x448] sm:$0xff] }
 0x246   : > { %3924 = vmatpush3.bf16.msra.mxu1 %v3923_v54  ;;  %3293 = vmatprep.mubr.msk.f32.mxu1 %vm4243_vm1, %v4244_v19  ;;  %v2611_v54 = vld [vmem:[%s5554_s3 + $0x310] sm:$0xff] }
 0x247   : > { %3238 = vmatmul.mubr.f32.gmra.mrb[40].mxu0 %v1091_v63  ;;  %3925 = vmatprep.subr.bf16.mxu1 %v4242_v52  ;;  %v3941_v61 = vpack.c.bf16 %v2612_v55, %v2611_v54  ;;  %v1562_v54 = vld [vmem:[#allocation3 + $0x2e] sm:$0xff] }
 0x248   : > { %3894 = vmatpush3.bf16.msra.mxu0 %v3893_v57  ;;  %3240 = vmatprep.mubr.msk.f32.mxu0 %vm4243_vm1, %v4244_v19  ;;  %v2634_v57 = vld [vmem:[%s5554_s3 + $0x3c8] sm:$0xff] }
 0x249   : > { %3895 = vmatprep.subr.bf16.mxu0 %v4242_v52  ;;  %3294 = vmatmul.mubr.f32.gmra.mrb[32].mxu1 %v4897_v7 }
 0x24a   : > { %3927 = vmatpush3.bf16.msra.mxu1 %v3926_v0  ;;  %3375 = vmatprep.mubr.msk.f32.mxu1 %vm4243_vm1, %v4244_v19  ;;  %v2636_v0 = vld [vmem:[%s5554_s3 + $0x3d8] sm:$0xff] }
 0x24b   : > { %3241 = vmatmul.mubr.f32.gmra.mrb[42].mxu0 %v1092_v10  ;;  %3928 = vmatprep.subr.bf16.mxu1 %v4242_v52  ;;  %v2637_v10 = vld [vmem:[%s5554_s3 + $0x3e0] sm:$0xff] }
 0x24c   : > { %3897 = vmatpush3.bf16.msra.mxu0 %v3896_v6  ;;  %3243 = vmatprep.mubr.msk.f32.mxu0 %vm4243_vm1, %v4244_v19  ;;  %v2615_v6 = vld [vmem:[%s5554_s3 + $0x330] sm:$0xff] }
 0x24d   : > { %3898 = vmatprep.subr.bf16.mxu0 %v4242_v52  ;;  %v3947_v12 = vpack.c.bf16 %v2616_v8, %v2615_v6 }
 0x24e   : > { %3930 = vmatpush3.bf16.msra.mxu1 %v3929_v11  ;;  %v2638_v11 = vld [vmem:[%s5554_s3 + $0x3e8] sm:$0xff] }
 0x24f   : > { %3244 = vmatmul.mubr.f32.gmra.mrb[44].mxu0 %v1093_v20  ;;  %3931 = vmatprep.subr.bf16.mxu1 %v4242_v52  ;;  %v3980_v17 = vpack.c.bf16 %v2638_v11, %v2637_v10  ;;  %v2640_v20 = vld [vmem:[%s5554_s3 + $0x3f8] sm:$0xff] }
 0x250   : > { %3900 = vmatpush3.bf16.msra.mxu0 %v3899_v16  ;;  %3246 = vmatprep.mubr.msk.f32.mxu0 %vm4243_vm1, %v4244_v19  ;;  %v2618_v16 = vld [vmem:[%s5554_s3 + $0x348] sm:$0xff] }
 0x251   : > { %3901 = vmatprep.subr.bf16.mxu0 %v4242_v52 }
 0x252   : > { %3933 = vmatpush3.bf16.msra.mxu1 %v3932_v21  ;;  %v3950_v21 = vpack.c.bf16 %v2618_v16, %v2617_v15 }
 0x253   : > { %3247 = vmatmul.mubr.f32.gmra.mrb[46].mxu0 %v1094_v28  ;;  %3934 = vmatprep.subr.bf16.mxu1 %v4242_v52  ;;  %v2622_v28 = vld [vmem:[%s5554_s3 + $0x368] sm:$0xff] }
 0x254   : > { %3903 = vmatpush3.bf16.msra.mxu0 %v3902_v25  ;;  %3328 = vmatprep.mubr.msk.f32.mxu0 %vm4243_vm1, %v4244_v19  ;;  %v3983_v25 = vpack.c.bf16 %v2640_v20, %v2639_v18 }
 0x255   : > { %3904 = vmatprep.subr.bf16.mxu0 %v4242_v52 }
 0x256   : > { %3936 = vmatpush3.bf16.msra.mxu1 %v3935_v29  ;;  %v3956_v29 = vpack.c.bf16 %v2622_v28, %v2621_v27 }
 0x257   : > { %3961 = vmatprep.subr.bf16.mxu1 %v4242_v52 }
 0x258   : > { %3906 = vmatpush3.bf16.msra.mxu0 %v3905_v32  ;;  %v3959_v32 = vpack.c.bf16 %v2624_v31, %v2623_v30  ;;  %v2001_v30 = vld [vmem:[%s5558_s7] sm:$0xff]  ;;  %v2002_v31 = vld [vmem:[%s5558_s7 + $0x8] sm:$0xff] }
 0x259   : > { %3907 = vmatprep.subr.bf16.mxu0 %v4242_v52  ;;  %3376 = vmatmul.mubr.f32.vlgmr.msra.gmra.mrb[34].mxu1 %v4723_v58  ;;  %v2630_v58 = vld [vmem:[%s5554_s3 + $0x3a8] sm:$0xff] }
 0x25a   : > { %3963 = vmatpush3.bf16.msra.mxu1 %v3962_v35  ;;  %3378 = vmatprep.mubr.msk.f32.mxu1 %vm4243_vm1, %v4244_v19  ;;  %v3968_v50 = vpack.c.bf16 %v2630_v58, %v2629_v5  ;;  %v2644_v35 = vld [vmem:[%s5554_s3 + $0x418] sm:$0xff] }
 0x25b   : > { %3964 = vmatprep.subr.bf16.mxu1 %v4242_v52  ;;  %v2648_v5 = vld [vmem:[%s5554_s3 + $0x438] sm:$0xff] }
 0x25c   : > { %3909 = vmatpush3.bf16.msra.mxu0 %v3908_v39  ;;  %v2646_v39 = vld [vmem:[%s5554_s3 + $0x428] sm:$0xff]  ;;  %v1560_v58 = vld [vmem:[#allocation3 + $0x1e] sm:$0xff] }
 0x25d   : > { %3910 = vmatprep.subr.bf16.mxu0 %v4242_v52  ;;  %3379 = vmatmul.mubr.f32.gmra.mrb[36].mxu1 %v4750_v4  ;;  %v2632_v4 = vld [vmem:[%s5554_s3 + $0x3b8] sm:$0xff] }
 0x25e   : > { %3966 = vmatpush3.bf16.msra.mxu1 %v3965_v44  ;;  %3381 = vmatprep.mubr.msk.f32.mxu1 %vm4243_vm1, %v4244_v19  ;;  %v3971_v56 = vpack.c.bf16 %v2632_v4, %v2631_v51  ;;  %v1679_v44 = vld [vmem:[#allocation3 + $0x2f] sm:$0xff]  ;;  %v3998_v51 = vpack.c.bf16 %v2650_v48, %v2649_v47 }
 0x25f   : > { %3967 = vmatprep.subr.bf16.mxu1 %v4242_v52  ;;  %v2651_v4 = vld [vmem:[%s5554_s3 + $0x450] sm:$0xff] }
 0x260   : > { %3912 = vmatpush3.bf16.msra.mxu0 %v3911_v46 }
 0x261   : > { %3937 = vmatprep.subr.bf16.mxu0 %v4242_v52  ;;  %3382 = vmatmul.mubr.f32.gmra.mrb[38].mxu1 %v4774_v14  ;;  %v2633_v14 = vld [vmem:[%s5554_s3 + $0x3c0] sm:$0xff] }
 0x262   : > { %3969 = vmatpush3.bf16.msra.mxu1 %v3968_v50  ;;  %3384 = vmatprep.mubr.msk.f32.mxu1 %vm4243_vm1, %v4244_v19  ;;  %v3974_v63 = vpack.c.bf16 %v2634_v57, %v2633_v14  ;;  %v1561_v50 = vld [vmem:[#allocation3 + $0x26] sm:$0xff] }
 0x263   : > { %3329 = vmatmul.mubr.f32.vlgmr.msra.gmra.mrb[48].mxu0 %v4672_v36  ;;  %3970 = vmatprep.subr.bf16.mxu1 %v4242_v52  ;;  %v2613_v36 = vld [vmem:[%s5554_s3 + $0x320] sm:$0xff]  ;;  %v2654_v14 = vld [vmem:[%s5554_s3 + $0x468] sm:$0xff] }
 0x264   : > { %3939 = vmatpush3.bf16.msra.mxu0 %v3938_v53  ;;  %3331 = vmatprep.mubr.msk.f32.mxu0 %vm4243_vm1, %v4244_v19  ;;  %v3944_v1 = vpack.c.bf16 %v2614_v62, %v2613_v36  ;;  %v2652_v53 = vld [vmem:[%s5554_s3 + $0x458] sm:$0xff] }
 0x265   : > { %3940 = vmatprep.subr.bf16.mxu0 %v4242_v52  ;;  %3385 = vmatmul.mubr.f32.gmra.mrb[40].mxu1 %v4794_v23  ;;  %v2635_v23 = vld [vmem:[%s5554_s3 + $0x3d0] sm:$0xff]  ;;  %v4001_v55 = vpack.c.bf16 %v2652_v53, %v2651_v4  ;;  %v2656_v36 = vld [vmem:[%s5554_s3 + $0x478] sm:$0xff] }
 0x266   : > { %3972 = vmatpush3.bf16.msra.mxu1 %v3971_v56  ;;  %3387 = vmatprep.mubr.msk.f32.mxu1 %vm4243_vm1, %v4244_v19  ;;  %v3977_v9 = vpack.c.bf16 %v2636_v0, %v2635_v23  ;;  %v2653_v56 = vld [vmem:[%s5554_s3 + $0x460] sm:$0xff] }
 0x267   : > { %3332 = vmatmul.mubr.f32.gmra.mrb[50].mxu0 %v4685_v41  ;;  %3973 = vmatprep.subr.bf16.mxu1 %v4242_v52  ;;  %v4004_v57 = vpack.c.bf16 %v2654_v14, %v2653_v56  ;;  %v2010_v56 = vld [vmem:[%s5558_s7 + $0x48] sm:$0xff] }
 0x268   : > { %3942 = vmatpush3.bf16.msra.mxu0 %v3941_v61  ;;  %3334 = vmatprep.mubr.msk.f32.mxu0 %vm4243_vm1, %v4244_v19  ;;  %v2655_v61 = vld [vmem:[%s5554_s3 + $0x470] sm:$0xff] }
 0x269   : > { %3943 = vmatprep.subr.bf16.mxu0 %v4242_v52  ;;  %3388 = vmatmul.mubr.f32.gmra.mrb[42].mxu1 %v1445_v2  ;;  %v4007_v62 = vpack.c.bf16 %v2656_v36, %v2655_v61 }
 0x26a   : > { %3975 = vmatpush3.bf16.msra.mxu1 %v3974_v63  ;;  %3469 = vmatprep.mubr.msk.f32.mxu1 %vm4243_vm1, %v4244_v19 }
 0x26b   : > { %3335 = vmatmul.mubr.f32.gmra.mrb[52].mxu0 %v4704_v49  ;;  %3976 = vmatprep.subr.bf16.mxu1 %v4242_v52 }
 0x26c   : > { %3945 = vmatpush3.bf16.msra.mxu0 %v3944_v1  ;;  %3337 = vmatprep.mubr.msk.f32.mxu0 %vm4243_vm1, %v4244_v19 }
 0x26d   : > { %3946 = vmatprep.subr.bf16.mxu0 %v4242_v52 }
 0x26e   : > { %3978 = vmatpush3.bf16.msra.mxu1 %v3977_v9 }
 0x26f   : > { %3338 = vmatmul.mubr.f32.gmra.mrb[54].mxu0 %v4725_v59  ;;  %3979 = vmatprep.subr.bf16.mxu1 %v4242_v52 }
 0x270   : > { %3948 = vmatpush3.bf16.msra.mxu0 %v3947_v12  ;;  %3340 = vmatprep.mubr.msk.f32.mxu0 %vm4243_vm1, %v4244_v19 }
 0x271   : > { %3949 = vmatprep.subr.bf16.mxu0 %v4242_v52 }
 0x272   : > { %3981 = vmatpush3.bf16.msra.mxu1 %v3980_v17 }
 0x273   : > { %3341 = vmatmul.mubr.f32.gmra.mrb[56].mxu0 %v4748_v3  ;;  %3982 = vmatprep.subr.bf16.mxu1 %v4242_v52 }
 0x274   : > { %3951 = vmatpush3.bf16.msra.mxu0 %v3950_v21  ;;  %3422 = vmatprep.mubr.msk.f32.mxu0 %vm4243_vm1, %v4244_v19 }
 0x275   : > { %3952 = vmatprep.subr.bf16.mxu0 %v4242_v52 }
 0x276   : > { %3984 = vmatpush3.bf16.msra.mxu1 %v3983_v25 }
 0x277   : > { %4009 = vmatprep.subr.bf16.mxu1 %v4242_v52 }
 0x278   : > { %3954 = vmatpush3.bf16.msra.mxu0 %v3953_v26 }
 0x279   : > { %3955 = vmatprep.subr.bf16.mxu0 %v4242_v52  ;;  %3470 = vmatmul.mubr.f32.vlgmr.msra.gmra.mrb[44].mxu1 %v4836_v40  ;;  %v2641_v40 = vld [vmem:[%s5554_s3 + $0x400] sm:$0xff] }
 0x27a   : > { %3472 = vmatprep.mubr.msk.f32.mxu1 %vm4243_vm1, %v4244_v19  ;;  %v3986_v34 = vpack.c.bf16 %v2642_v33, %v2641_v40  ;;  %v2003_v40 = vld [vmem:[%s5558_s7 + $0x10] sm:$0xff]  ;;  %v2004_v33 = vld [vmem:[%s5558_s7 + $0x18] sm:$0xff] }
 0x27c   : > { %3957 = vmatpush3.bf16.msra.mxu0 %v3956_v29 }
 0x27d   : > { %3958 = vmatprep.subr.bf16.mxu0 %v4242_v52  ;;  %3473 = vmatmul.mubr.f32.gmra.mrb[46].mxu1 %v4849_v45  ;;  %v2643_v45 = vld [vmem:[%s5554_s3 + $0x410] sm:$0xff] }
 0x27e   : > { %3475 = vmatprep.mubr.msk.f32.mxu1 %vm4243_vm1, %v4244_v19  ;;  %v3989_v38 = vpack.c.bf16 %v2644_v35, %v2643_v45  ;;  %v4043_v45 = vpack.c.bf16 %v2004_v33, %v2003_v40 }
 0x280   : > { %3960 = vmatpush3.bf16.msra.mxu0 %v3959_v32  ;;  %v4040_v32 = vpack.c.bf16 %v2002_v31, %v2001_v30 }
 0x281   : > { %3985 = vmatprep.subr.bf16.mxu0 %v4242_v52  ;;  %3476 = vmatmul.mubr.f32.gmra.mrb[48].mxu1 %v4876_v60  ;;  %v2645_v60 = vld [vmem:[%s5554_s3 + $0x420] sm:$0xff] }
 0x282   : > { %3478 = vmatprep.mubr.msk.f32.mxu1 %vm4243_vm1, %v4244_v19  ;;  %v3992_v43 = vpack.c.bf16 %v2646_v39, %v2645_v60 }
 0x283   : > { %3423 = vmatmul.mubr.f32.vlgmr.msra.gmra.mrb[58].mxu0 %v1558_v37  ;;  %v2005_v37 = vld [vmem:[%s5558_s7 + $0x20] sm:$0xff] }
 0x284   : > { %3987 = vmatpush3.bf16.msra.mxu0 %v3986_v34  ;;  %3425 = vmatprep.mubr.msk.f32.mxu0 %vm4243_vm1, %v4244_v19 }
 0x285   : > { %3988 = vmatprep.subr.bf16.mxu0 %v4242_v52  ;;  %3479 = vmatmul.mubr.f32.gmra.mrb[50].mxu1 %v4897_v7  ;;  %v2647_v7 = vld [vmem:[%s5554_s3 + $0x430] sm:$0xff] }
 0x286   : > { %3481 = vmatprep.mubr.msk.f32.mxu1 %vm4243_vm1, %v4244_v19  ;;  %v3995_v46 = vpack.c.bf16 %v2648_v5, %v2647_v7 }
 0x287   : > { %3426 = vmatmul.mubr.f32.gmra.mrb[60].mxu0 %v1559_v42 }
 0x288   : > { %3990 = vmatpush3.bf16.msra.mxu0 %v3989_v38  ;;  %3428 = vmatprep.mubr.msk.f32.mxu0 %vm4243_vm1, %v4244_v19  ;;  %v2006_v38 = vld [vmem:[%s5558_s7 + $0x28] sm:$0xff] }
 0x289   : > { %3991 = vmatprep.subr.bf16.mxu0 %v4242_v52  ;;  %3482 = vmatmul.mubr.f32.gmra.mrb[52].mxu1 %v1679_v44 }
 0x28a   : > { %3541 = vmatprep.mubr.msk.f32.mxu1 %vm4243_vm1, %v4244_v19 }
 0x28b   : > { %3429 = vmatmul.mubr.f32.gmra.mrb[62].mxu0 %v1560_v58  ;;  %v2007_v58 = vld [vmem:[%s5558_s7 + $0x30] sm:$0xff] }
 0x28c   : > { %3993 = vmatpush3.bf16.msra.mxu0 %v3992_v43  ;;  %3431 = vmatprep.mubr.msk.f32.mxu0 %vm4243_vm1, %v4244_v19  ;;  %v4046_v43 = vpack.c.bf16 %v2006_v38, %v2005_v37 }
 0x28d   : > { %3994 = vmatprep.subr.bf16.mxu0 %v4242_v52 }
 0x28f   : > { %3432 = vmatmul.mubr.f32.gmra.mrb[64].mxu0 %v1561_v50 }
 0x290   : > { %3996 = vmatpush3.bf16.msra.mxu0 %v3995_v46  ;;  %3434 = vmatprep.mubr.msk.f32.mxu0 %vm4243_vm1, %v4244_v19  ;;  %v2008_v46 = vld [vmem:[%s5558_s7 + $0x38] sm:$0xff] }
 0x291   : > { %3997 = vmatprep.subr.bf16.mxu0 %v4242_v52 }
 0x293   : > { %3435 = vmatmul.mubr.f32.gmra.mrb[66].mxu0 %v1562_v54 }
 0x294   : > { %3999 = vmatpush3.bf16.msra.mxu0 %v3998_v51  ;;  %3516 = vmatprep.mubr.msk.f32.mxu0 %vm4243_vm1, %v4244_v19  ;;  %v4049_v51 = vpack.c.bf16 %v2008_v46, %v2007_v58 }
 0x295   : > { %4000 = vmatprep.subr.bf16.mxu0 %v4242_v52 }
 0x298   : > { %4002 = vmatpush3.bf16.msra.mxu0 %v4001_v55  ;;  %v2009_v55 = vld [vmem:[%s5558_s7 + $0x40] sm:$0xff] }
 0x299   : > { %4003 = vmatprep.subr.bf16.mxu0 %v4242_v52  ;;  %v4052_v36 = vpack.c.bf16 %v2010_v56, %v2009_v55 }
 0x29c   : > { %4005 = vmatpush3.bf16.msra.mxu0 %v4004_v57 }
 0x29d   : > { %4006 = vmatprep.subr.bf16.mxu0 %v4242_v52 }
 0x2a0   : > { %4008 = vmatpush3.bf16.msra.mxu0 %v4007_v62 }
 0x2a1   : > { %4039 = vmatprep.subr.bf16.mxu0 %v4242_v52 }
 0x2a3   : > { %3517 = vmatmul.mubr.f32.vlgmr.msra.gmra.mrb[68].mxu0 %v4685_v41 }
 0x2a4   : > { %3519 = vmatprep.mubr.msk.f32.mxu0 %vm4243_vm1, %v4244_v19  ;;  %4041 = vmatpush3.bf16.msra.mxu0 %v4040_v32 }
 0x2a5   : > { %4042 = vmatprep.subr.bf16.mxu0 %v4242_v52 }
 0x2a7   : > { %3520 = vmatmul.mubr.f32.gmra.mrb[70].mxu0 %v4704_v49 }
 0x2a8   : > { %3522 = vmatprep.mubr.msk.f32.mxu0 %vm4243_vm1, %v4244_v19  ;;  %4044 = vmatpush3.bf16.msra.mxu0 %v4043_v45 }
 0x2a9   : > { %4045 = vmatprep.subr.bf16.mxu0 %v4242_v52 }
 0x2ab   : > { %3523 = vmatmul.mubr.f32.gmra.mrb[72].mxu0 %v4725_v59 }
 0x2ac   : > { %3525 = vmatprep.mubr.msk.f32.mxu0 %vm4243_vm1, %v4244_v19  ;;  %4047 = vmatpush3.bf16.msra.mxu0 %v4046_v43 }
 0x2ad   : > { %4048 = vmatprep.subr.bf16.mxu0 %v4242_v52 }
 0x2af   : > { %3526 = vmatmul.mubr.f32.gmra.mrb[74].mxu0 %v4748_v3 }
 0x2b0   : > { %3528 = vmatprep.mubr.msk.f32.mxu0 %vm4243_vm1, %v4244_v19  ;;  %4050 = vmatpush3.bf16.msra.mxu0 %v4049_v51 }
 0x2b1   : > { %4051 = vmatprep.subr.bf16.mxu0 %v4242_v52 }
 0x2b3   : > { %3529 = vmatmul.mubr.f32.gmra.mrb[76].mxu0 %v4772_v13 }
 0x2b4   : > { %3611 = vmatprep.mubr.msk.f32.mxu0 %vm4243_vm1, %v4244_v19  ;;  %4053 = vmatpush3.bf16.msra.mxu0 %v4052_v36 }
 0x2b5   : > { %4054 = vmatprep.subr.bf16.mxu0 %v4242_v52 }
 0x2ea   : > { %v1066_v41 = vpop.f32.mrb[14].mxu1 }
 0x2eb   : > { %v3189_v49 = vpop.f32.mrb[15].mxu1 }
 0x2ec   : > { %v2012_v49 = vld [vmem:[%s5558_s7 + $0x58] sm:$0xff] }
 0x2ee   : > { %v1071_v63 = vpop.f32.mrb[16].mxu1 }
 0x2ef   : > { %v3192_v23 = vpop.f32.mrb[17].mxu1 }
 0x2f2   : > { %v1076_v0 = vpop.f32.mrb[18].mxu1 }
 0x2f3   : > { %v3195_v1 = vpop.f32.mrb[19].mxu1 }
 0x2f6   : > { %v976_v59 = vpop.f32.mrb[28].mxu0  ;;  %v1081_v2 = vpop.f32.mrb[20].mxu1 }
 0x2f7   : > { %v1067_v6 = vadd.f32 %v1066_v41, %v976_v59  ;;  %v3142_v8 = vpop.f32.mrb[29].mxu0  ;;  %v3198_v9 = vpop.f32.mrb[21].mxu1  ;;  %v2011_v41 = vld [vmem:[%s5558_s7 + $0x50] sm:$0xff] }
 0x2f8   : > { %v4055_v1 = vpack.c.bf16 %v2012_v49, %v2011_v41 }
 0x2fa   : > { %v981_v3 = vpop.f32.mrb[30].mxu0  ;;  %v1086_v10 = vpop.f32.mrb[22].mxu1  ;;  %4056 = vmatpush3.bf16.msra.mxu0 %v4055_v1 }
 0x2fb   : > { %v1072_v11 = vadd.f32 %v1071_v63, %v981_v3  ;;  %v3145_v12 = vpop.f32.mrb[31].mxu0  ;;  %v3201_v15 = vpop.f32.mrb[23].mxu1  ;;  %4057 = vmatprep.subr.bf16.mxu0 %v4242_v52 }
 0x2fc   : > { %v2015_v12 = vld [vmem:[%s5558_s7 + $0x70] sm:$0xff]  ;;  %v2016_v15 = vld [vmem:[%s5558_s7 + $0x78] sm:$0xff] }
 0x2fe   : > { %v986_v13 = vpop.f32.mrb[32].mxu0 }
 0x2ff   : > { %v1077_v16 = vadd.f32 %v1076_v0, %v986_v13  ;;  %v3148_v17 = vpop.f32.mrb[33].mxu0  ;;  %v4061_v13 = vpack.c.bf16 %v2016_v15, %v2015_v12 }
 0x302   : > { %v991_v18 = vpop.f32.mrb[34].mxu0 }
 0x303   : > { %v1082_v20 = vadd.f32 %v1081_v2, %v991_v18  ;;  %v3151_v21 = vpop.f32.mrb[35].mxu0  ;;  %v2013_v2 = vld [vmem:[%s5558_s7 + $0x60] sm:$0xff] }
 0x306   : > { %v996_v22 = vpop.f32.mrb[36].mxu0 }
 0x307   : > { %v1087_v24 = vadd.f32 %v1086_v10, %v996_v22  ;;  %v3154_v25 = vpop.f32.mrb[37].mxu0 }
 0x30b   : > { %v1295_v26 = vpop.f32.mrb[24].mxu1 }
 0x30c   : > { %v3283_v27 = vpop.f32.mrb[25].mxu1 }
 0x30f   : > { %v1300_v28 = vpop.f32.mrb[26].mxu1 }
 0x310   : > { %v3286_v29 = vpop.f32.mrb[27].mxu1 }
 0x313   : > { %v1305_v34 = vpop.f32.mrb[28].mxu1 }
 0x314   : > { %v3289_v35 = vpop.f32.mrb[29].mxu1 }
 0x316   : > { %v1178_v60 = vpop.f32.mrb[38].mxu0 }
 0x317   : > { %v1202_v39 = vadd.f32 %v1178_v60, %v1067_v6  ;;  %v3236_v42 = vpop.f32.mrb[39].mxu0  ;;  %v2014_v6 = vld [vmem:[%s5558_s7 + $0x68] sm:$0xff] }
 0x318   : > { %v1310_v44 = vpop.f32.mrb[30].mxu1  ;;  %v4058_v10 = vpack.c.bf16 %v2014_v6, %v2013_v2 }
 0x319   : > { %v3292_v7 = vpop.f32.mrb[31].mxu1  ;;  %v1319_v5 = vadd.f32 %v1295_v26, %v1202_v39 }
 0x31a   : > { %v1183_v47 = vpop.f32.mrb[40].mxu0  ;;  %4059 = vmatpush3.bf16.msra.mxu0 %v4058_v10 }
 0x31b   : > { %v1203_v48 = vadd.f32 %v1183_v47, %v1072_v11  ;;  %v3239_v50 = vpop.f32.mrb[41].mxu0  ;;  %4060 = vmatprep.subr.bf16.mxu0 %v4242_v52 }
 0x31c   : > { %v1315_v4 = vpop.f32.mrb[32].mxu1 }
 0x31d   : > { %v3295_v53 = vpop.f32.mrb[33].mxu1  ;;  %v1320_v54 = vadd.f32 %v1300_v28, %v1203_v48 }
 0x31e   : > { %v1188_v14 = vpop.f32.mrb[42].mxu0  ;;  %4062 = vmatpush3.bf16.msra.mxu0 %v4061_v13 }
 0x31f   : > { %v1204_v57 = vadd.f32 %v1188_v14, %v1077_v16  ;;  %v3242_v61 = vpop.f32.mrb[43].mxu0  ;;  %4087 = vmatprep.subr.bf16.mxu0 %v4242_v52 }
 0x321   : > { %v1321_v62 = vadd.f32 %v1305_v34, %v1204_v57 }
 0x322   : > { %v1193_v63 = vpop.f32.mrb[44].mxu0 }
 0x323   : > { %v1205_v23 = vadd.f32 %v1193_v63, %v1082_v20  ;;  %v3245_v0 = vpop.f32.mrb[45].mxu0 }
 0x325   : > { %v1322_v59 = vadd.f32 %v1310_v44, %v1205_v23 }
 0x326   : > { %v1198_v8 = vpop.f32.mrb[46].mxu0 }
 0x327   : > { %v1206_v9 = vadd.f32 %v1198_v8, %v1087_v24  ;;  %v3248_v3 = vpop.f32.mrb[47].mxu0 }
 0x329   : > { %v1323_v11 = vadd.f32 %v1315_v4, %v1206_v9 }
 0x32c   : > { %v1529_v16 = vpop.f32.mrb[34].mxu1 }
 0x32d   : > { %v3377_v17 = vpop.f32.mrb[35].mxu1 }
 0x32e   : > { %v2657_v17 = vld [vmem:[%s5555_s4] ss:$0 sm:$0xff] }
 0x330   : > { %v1534_v18 = vpop.f32.mrb[36].mxu1 }
 0x331   : > { %v3380_v20 = vpop.f32.mrb[37].mxu1 }
 0x334   : > { %v1539_v21 = vpop.f32.mrb[38].mxu1 }
 0x335   : > { %v3383_v22 = vpop.f32.mrb[39].mxu1 }
 0x336   : > { %v1412_v24 = vpop.f32.mrb[48].mxu0 }
 0x337   : > { %v1436_v25 = vadd.f32 %v1412_v24, %v1319_v5  ;;  %v3330_v26 = vpop.f32.mrb[49].mxu0 }
 0x338   : > { %v1544_v27 = vpop.f32.mrb[40].mxu1 }
 0x339   : > { %v3386_v28 = vpop.f32.mrb[41].mxu1  ;;  %v1553_v29 = vadd.f32 %v1529_v16, %v1436_v25 }
 0x33a   : > { %v1417_v30 = vpop.f32.mrb[50].mxu0 }
 0x33b   : > { %v1437_v31 = vadd.f32 %v1417_v30, %v1320_v54  ;;  %v3333_v32 = vpop.f32.mrb[51].mxu0 }
 0x33c   : > { %v1549_v40 = vpop.f32.mrb[42].mxu1 }
 0x33d   : > { %v3389_v33 = vpop.f32.mrb[43].mxu1  ;;  %v1554_v34 = vadd.f32 %v1534_v18, %v1437_v31 }
 0x33e   : > { %v1422_v45 = vpop.f32.mrb[52].mxu0 }
 0x33f   : > { %v1438_v35 = vadd.f32 %v1422_v45, %v1321_v62  ;;  %v3336_v37 = vpop.f32.mrb[53].mxu0 }
 0x341   : > { %v1555_v38 = vadd.f32 %v1539_v21, %v1438_v35 }
 0x342   : > { %v1427_v60 = vpop.f32.mrb[54].mxu0 }
 0x343   : > { %v1439_v39 = vadd.f32 %v1427_v60, %v1322_v59  ;;  %v3339_v42 = vpop.f32.mrb[55].mxu0 }
 0x345   : > { %v1556_v43 = vadd.f32 %v1544_v27, %v1439_v39 }
 0x346   : > { %v1432_v44 = vpop.f32.mrb[56].mxu0 }
 0x347   : > { %v1440_v7 = vadd.f32 %v1432_v44, %v1323_v11  ;;  %v3342_v5 = vpop.f32.mrb[57].mxu0  ;;  %v2660_v44 = vld [vmem:[%s5558_s7 + $0x88] sm:$0xff] }
 0x348   : > { %v1926_v5 = vld [vmem:[%s5557_s6] sm:$0xff] }
 0x349   : > { %v1557_v58 = vadd.f32 %v1549_v40, %v1440_v7 }
 0x34c   : > { %v1763_v46 = vpop.f32.mrb[44].mxu1 }
 0x34d   : > { %v3471_v47 = vpop.f32.mrb[45].mxu1 }
 0x34e   : > { %v2662_v47 = vld [vmem:[%s5558_s7 + $0x98] sm:$0xff] }
 0x350   : > { %v1768_v48 = vpop.f32.mrb[46].mxu1 }
 0x351   : > { %v3474_v50 = vpop.f32.mrb[47].mxu1 }
 0x352   : > { %v2663_v50 = vld [vmem:[%s5558_s7 + $0xa0] sm:$0xff] }
 0x354   : > { %v1773_v51 = vpop.f32.mrb[48].mxu1 }
 0x355   : > { %v3477_v4 = vpop.f32.mrb[49].mxu1 }
 0x356   : > { %v1646_v53 = vpop.f32.mrb[58].mxu0 }
 0x357   : > { %v1670_v54 = vadd.f32 %v1646_v53, %v1553_v29  ;;  %v3424_v55 = vpop.f32.mrb[59].mxu0  ;;  %v2665_v53 = vld [vmem:[%s5558_s7 + $0xb0] sm:$0xff] }
 0x358   : > { %v1778_v56 = vpop.f32.mrb[50].mxu1 }
 0x359   : > { %v3480_v14 = vpop.f32.mrb[51].mxu1  ;;  %v1787_v57 = vadd.f32 %v1763_v46, %v1670_v54  ;;  %v2661_v46 = vld [vmem:[%s5558_s7 + $0x90] sm:$0xff]  ;;  %v2666_v54 = vld [vmem:[%s5558_s7 + $0xb8] sm:$0xff] }
 0x35a   : > { %v1651_v61 = vpop.f32.mrb[60].mxu0  ;;  %v4025_v55 = vpack.c.bf16 %v2666_v54, %v2665_v53  ;;  %v2668_v14 = vld [vmem:[%s5558_s7 + $0xc8] sm:$0xff]  ;;  %v2689_v53 = vld [vmem:[%s5558_s7 + $0x170] sm:$0xff]  ;;  %v2690_v54 = vld [vmem:[%s5558_s7 + $0x178] sm:$0xff] }
 0x35b   : > { %v1671_v36 = vadd.f32 %v1651_v61, %v1554_v34  ;;  %v3427_v62 = vpop.f32.mrb[61].mxu0  ;;  %v2669_v61 = vld [vmem:[%s5558_s7 + $0xd0] sm:$0xff] }
 0x35c   : > { %v1783_v41 = vpop.f32.mrb[52].mxu1 }
 0x35d   : > { %v3483_v49 = vpop.f32.mrb[53].mxu1  ;;  %v1788_v63 = vadd.f32 %v1768_v48, %v1671_v36  ;;  %v4019_v48 = vpack.c.bf16 %v2662_v47, %v2661_v46  ;;  %v2670_v36 = vld [vmem:[%s5558_s7 + $0xd8] sm:$0xff]  ;;  %v2687_v46 = vld [vmem:[%s5558_s7 + $0x160] sm:$0xff]  ;;  %v2688_v47 = vld [vmem:[%s5558_s7 + $0x168] sm:$0xff] }
 0x35e   : > { %v1656_v23 = vpop.f32.mrb[62].mxu0  ;;  %v4031_v62 = vpack.c.bf16 %v2670_v36, %v2669_v61  ;;  %v2672_v49 = vld [vmem:[%s5558_s7 + $0xe8] sm:$0xff]  ;;  %v2360_v61 = vld [vmem:[%s5560_s9] sm:$0xff] }
 0x35f   : > { %v1672_v0 = vadd.f32 %v1656_v23, %v1555_v38  ;;  %v3430_v1 = vpop.f32.mrb[63].mxu0  ;;  %v2673_v23 = vld [vmem:[%s5558_s7 + $0xf0] sm:$0xff]  ;;  %v2361_v36 = vld [vmem:[%s5560_s9 + $0x8] sm:$0xff] }
 0x361   : > { %v1789_v59 = vadd.f32 %v1773_v51, %v1672_v0  ;;  %v2664_v51 = vld [vmem:[%s5558_s7 + $0xa8] sm:$0xff]  ;;  %v2674_v0 = vld [vmem:[%s5558_s7 + $0xf8] sm:$0xff] }
 0x362   : > { %v1661_v2 = vpop.f32.mrb[64].mxu0  ;;  %v4022_v4 = vpack.c.bf16 %v2664_v51, %v2663_v50  ;;  %v4037_v1 = vpack.c.bf16 %v2674_v0, %v2673_v23  ;;  %v2705_v50 = vld [vmem:[%s5558_s7 + $0x1f0] sm:$0xff]  ;;  %v2706_v51 = vld [vmem:[%s5558_s7 + $0x1f8] sm:$0xff]  ;;  %v2365_v23 = vld [vmem:[%s5560_s9 + $0x28] sm:$0xff] }
 0x363   : > { %v1673_v6 = vadd.f32 %v1661_v2, %v1556_v43  ;;  %v3433_v8 = vpop.f32.mrb[65].mxu0  ;;  %v2659_v43 = vld [vmem:[%s5558_s7 + $0x80] sm:$0xff]  ;;  %v2692_v2 = vld [vmem:[%s5558_s7 + $0x188] sm:$0xff] }
 0x364   : > { %v2676_v8 = vld [vmem:[%s5558_s7 + $0x108] sm:$0xff] }
 0x365   : > { %v1790_v9 = vadd.f32 %v1778_v56, %v1673_v6  ;;  %v2667_v56 = vld [vmem:[%s5558_s7 + $0xc0] sm:$0xff] }
 0x366   : > { %v1666_v3 = vpop.f32.mrb[66].mxu0  ;;  %v2675_v6 = vld [vmem:[%s5558_s7 + $0x100] sm:$0xff] }
 0x367   : > { %v1674_v10 = vadd.f32 %v1666_v3, %v1557_v58  ;;  %v3436_v11 = vpop.f32.mrb[67].mxu0  ;;  %v4016_v58 = vpack.c.bf16 %v2660_v44, %v2659_v43  ;;  %v2693_v3 = vld [vmem:[%s5558_s7 + $0x190] sm:$0xff]  ;;  %v2686_v43 = vld [vmem:[%s5558_s7 + $0x158] sm:$0xff] }
 0x369   : > { %v1791_v12 = vadd.f32 %v1783_v41, %v1674_v10  ;;  %v2671_v41 = vld [vmem:[%s5558_s7 + $0xe0] sm:$0xff]  ;;  %v2694_v10 = vld [vmem:[%s5558_s7 + $0x198] sm:$0xff] }
 0x376   : > { %v1880_v15 = vpop.f32.mrb[68].mxu0 }
 0x377   : > { %v1904_v13 = vadd.f32 %v1880_v15, %v1787_v57  ;;  %v3518_v16 = vpop.f32.mrb[69].mxu0  ;;  %v4028_v57 = vpack.c.bf16 %v2668_v14, %v2667_v56  ;;  %v4085_v56 = vpack.c.bf16 %v2690_v54, %v2689_v53 }
 0x378   : > { %v2678_v16 = vld [vmem:[%s5558_s7 + $0x118] sm:$0xff] }
 0x379   : > { %v1916_v20 = vadd.f32 %v2657_v17, %v1904_v13  ;;  %v2677_v13 = vld [vmem:[%s5558_s7 + $0x110] sm:$0xff] }
 0x37a   : > { %v1885_v18 = vpop.f32.mrb[70].mxu0 }
 0x37b   : > { %v1905_v21 = vadd.f32 %v1885_v18, %v1788_v63  ;;  %v3521_v22 = vpop.f32.mrb[71].mxu0  ;;  %v1921_v26 = vmax.f32 %v1916_v20, 0.0  ;;  %v4034_v63 = vpack.c.bf16 %v2672_v49, %v2671_v41  ;;  %v4091_v18 = vpack.c.bf16 %v2694_v10, %v2693_v3  ;;  %v2695_v20 = vld [vmem:[%s5558_s7 + $0x1a0] sm:$0xff]  ;;  %v2363_v49 = vld [vmem:[%s5560_s9 + $0x18] sm:$0xff]  ;;  %v2370_v3 = vld [vmem:[%s5560_s9 + $0x50] sm:$0xff] }
 0x37c   : > { %v4067_v22 = vpack.c.bf16 %v2678_v16, %v2677_v13  ;;  %v4112_v41 = vpack.c.bf16 %v2361_v36, %v2360_v61  ;;  %v2371_v10 = vld [vmem:[%s5560_s9 + $0x58] sm:$0xff]  ;;  %v2374_v16 = vld [vmem:[%s5560_s9 + $0x70] sm:$0xff] }
 0x37d   : > { %v1917_v24 = vadd.f32 %v2657_v17, %v1905_v21  ;;  %v2696_v21 = vld [vmem:[%s5558_s7 + $0x1a8] sm:$0xff] }
 0x37e   : > { %v1890_v25 = vpop.f32.mrb[72].mxu0 }
 0x37f   : > { %v1922_v27 = vmax.f32 %v1917_v24, 0.0  ;;  %v1906_v28 = vadd.f32 %v1890_v25, %v1789_v59  ;;  %v3524_v29 = vpop.f32.mrb[73].mxu0  ;;  %v2691_v59 = vld [vmem:[%s5558_s7 + $0x180] sm:$0xff]  ;;  %v2680_v25 = vld [vmem:[%s5558_s7 + $0x128] sm:$0xff] }
 0x380   : > { %v2679_v24 = vld [vmem:[%s5558_s7 + $0x120] sm:$0xff] }
 0x381   : > { %v4010_v30 = vpack.c.bf16 %v1922_v27, %v1921_v26  ;;  %v1918_v32 = vadd.f32 %v2657_v17, %v1906_v28  ;;  %v4094_v26 = vpack.c.bf16 %v2696_v21, %v2695_v20  ;;  %v2697_v27 = vld [vmem:[%s5558_s7 + $0x1b0] sm:$0xff]  ;;  %v2698_v28 = vld [vmem:[%s5558_s7 + $0x1b8] sm:$0xff]  ;;  %v4070_v29 = vpack.c.bf16 %v2680_v25, %v2679_v24 }
 0x382   : > { %v1895_v31 = vpop.f32.mrb[74].mxu0 }
 0x383   : > { %v1907_v40 = vadd.f32 %v1895_v31, %v1790_v9  ;;  %v3527_v33 = vpop.f32.mrb[75].mxu0  ;;  %4011 = vmatpush3.bf16.msra.mxu1 %v4010_v30  ;;  %v1923_v35 = vmax.f32 %v1918_v32, 0.0  ;;  %v4088_v9 = vpack.c.bf16 %v2692_v2, %v2691_v59  ;;  %v2681_v30 = vld [vmem:[%s5558_s7 + $0x130] sm:$0xff]  ;;  %v2682_v31 = vld [vmem:[%s5558_s7 + $0x138] sm:$0xff]  ;;  %v4097_v32 = vpack.c.bf16 %v2698_v28, %v2697_v27 }
 0x384   : > { %4012 = vmatprep.subr.bf16.mxu1 %v4242_v52  ;;  %v2700_v33 = vld [vmem:[%s5558_s7 + $0x1c8] sm:$0xff]  ;;  %v2367_v59 = vld [vmem:[%s5560_s9 + $0x38] sm:$0xff] }
 0x385   : > { %v1919_v34 = vadd.f32 %v2657_v17, %v1907_v40  ;;  %v2699_v40 = vld [vmem:[%s5558_s7 + $0x1c0] sm:$0xff] }
 0x386   : > { %v1900_v45 = vpop.f32.mrb[76].mxu0 }
 0x387   : > { %v1924_v37 = vmax.f32 %v1919_v34, 0.0  ;;  %v1908_v38 = vadd.f32 %v1900_v45, %v1791_v12  ;;  %v3530_v60 = vpop.f32.mrb[77].mxu0  ;;  %v4064_v12 = vpack.c.bf16 %v2676_v8, %v2675_v6  ;;  %v4073_v34 = vpack.c.bf16 %v2682_v31, %v2681_v30  ;;  %v2683_v45 = vld [vmem:[%s5558_s7 + $0x140] sm:$0xff]  ;;  %v2369_v8 = vld [vmem:[%s5560_s9 + $0x48] sm:$0xff] }
 0x388   : > { %v2702_v60 = vld [vmem:[%s5558_s7 + $0x1d8] sm:$0xff]  ;;  %v2368_v6 = vld [vmem:[%s5560_s9 + $0x40] sm:$0xff] }
 0x389   : > { %v4013_v39 = vpack.c.bf16 %v1924_v37, %v1923_v35  ;;  %v1920_v42 = vadd.f32 %v2657_v17, %v1908_v38  ;;  %v2684_v35 = vld [vmem:[%s5558_s7 + $0x148] sm:$0xff]  ;;  %v4100_v37 = vpack.c.bf16 %v2700_v33, %v2699_v40  ;;  %v2701_v38 = vld [vmem:[%s5558_s7 + $0x1d0] sm:$0xff]  ;;  %v2357_v30 = vld [vmem:[%s5559_s8] sm:$0x1] }
 0x38a   : > { %v4103_v44 = vpack.c.bf16 %v2702_v60, %v2701_v38  ;;  %v2376_v33 = vld [vmem:[%s5561_s10] sm:$0x1] }
 0x38b   : > { %4014 = vmatpush3.bf16.msra.mxu1 %v4013_v39  ;;  %v1925_v7 = vmax.f32 %v1920_v42, 0.0  ;;  %v4076_v39 = vpack.c.bf16 %v2684_v35, %v2683_v45  ;;  %v2685_v42 = vld [vmem:[%s5558_s7 + $0x150] sm:$0xff] }
 0x38c   : > { %3539 = vmatprep.subr.mxu1 %v4244_v19 }
 0x38f   : > { %3540 = vmatpush3.msra.mxu1 %v1925_v7  ;;  %v2703_v7 = vld [vmem:[%s5558_s7 + $0x1e0] sm:$0xff] }
 0x390   : > { %3542 = vmatmul.mubr.msk.f32.vlgmr.msra.gmra.mrb[54].mxu1 %vm1927_vm2, %v1926_v5  ;;  %4015 = vmatprep.subr.bf16.mxu1 %v4242_v52  ;;  %v2704_v5 = vld [vmem:[%s5558_s7 + $0x1e8] sm:$0xff] }
 0x391   : > { %4017 = vmatpush3.bf16.msra.mxu1 %v4016_v58  ;;  %3576 = vmatprep.mubr.msk.f32.mxu1 %vm4243_vm1, %v4244_v19  ;;  %v4079_v58 = vpack.c.bf16 %v2686_v43, %v2685_v42 }
 0x392   : > { %4018 = vmatprep.subr.bf16.mxu1 %v4242_v52 }
 0x395   : > { %4020 = vmatpush3.bf16.msra.mxu1 %v4019_v48  ;;  %v4106_v48 = vpack.c.bf16 %v2704_v5, %v2703_v7 }
 0x396   : > { %4021 = vmatprep.subr.bf16.mxu1 %v4242_v52 }
 0x399   : > { %4023 = vmatpush3.bf16.msra.mxu1 %v4022_v4  ;;  %v4082_v4 = vpack.c.bf16 %v2688_v47, %v2687_v46 }
 0x39a   : > { %4024 = vmatprep.subr.bf16.mxu1 %v4242_v52 }
 0x39d   : > { %4026 = vmatpush3.bf16.msra.mxu1 %v4025_v55  ;;  %v4109_v55 = vpack.c.bf16 %v2706_v51, %v2705_v50 }
 0x39e   : > { %4027 = vmatprep.subr.bf16.mxu1 %v4242_v52 }
 0x3a1   : > { %4029 = vmatpush3.bf16.msra.mxu1 %v4028_v57 }
 0x3a2   : > { %4030 = vmatprep.subr.bf16.mxu1 %v4242_v52 }
 0x3a5   : > { %4032 = vmatpush3.bf16.msra.mxu1 %v4031_v62  ;;  %v2362_v62 = vld [vmem:[%s5560_s9 + $0x10] sm:$0xff] }
 0x3a6   : > { %4033 = vmatprep.subr.bf16.mxu1 %v4242_v52 }
 0x3a9   : > { %4035 = vmatpush3.bf16.msra.mxu1 %v4034_v63  ;;  %v4115_v63 = vpack.c.bf16 %v2363_v49, %v2362_v62 }
 0x3aa   : > { %4036 = vmatprep.subr.bf16.mxu1 %v4242_v52 }
 0x3ad   : > { %4038 = vmatpush3.bf16.msra.mxu1 %v4037_v1  ;;  %v2366_v1 = vld [vmem:[%s5560_s9 + $0x30] sm:$0xff] }
 0x3ae   : > { %4063 = vmatprep.subr.bf16.mxu1 %v4242_v52  ;;  %v4121_v2 = vpack.c.bf16 %v2367_v59, %v2366_v1 }
 0x463   : > { %v5338_v11 = vpop.f32.mrb[54].mxu1 }
 0x464   : > { %v2035_v15 = vrot.slane %v5338_v11, 1  ;;  %3612 = vmatmul.mubr.f32.vlgmr.msra.gmra.mrb[78].mxu0 %v5338_v11  ;;  %v3543_v17 = vpop.f32.mrb[55].mxu1  ;;  %v2284_v14 = vrot.slane %v5338_v11, 3  ;;  %v2194_v57 = vrot.slane %v5338_v11, 2  ;;  %v4127_v11 = vpack.c.bf16 %v2371_v10, %v2370_v3 }
 0x465   : > { %4089 = vmatpush3.bf16.msra.mxu0 %v4088_v9  ;;  %3681 = vmatprep.mubr.msk.f32.mxu0 %vm4243_vm1, %v4244_v19  ;;  %v4124_v9 = vpack.c.bf16 %v2369_v8, %v2368_v6  ;;  %v2375_v17 = vld [vmem:[%s5560_s9 + $0x78] sm:$0xff] }
 0x466   : > { %3577 = vmatmul.mubr.f32.vlgmr.msra.gmra.mrb[56].mxu1 %v2035_v15  ;;  %4090 = vmatprep.subr.bf16.mxu0 %v4242_v52  ;;  %v2373_v15 = vld [vmem:[%s5560_s9 + $0x68] sm:$0xff] }
 0x467   : > { %4065 = vmatpush3.bf16.msra.mxu1 %v4064_v12  ;;  %3646 = vmatprep.mubr.msk.f32.mxu1 %vm4243_vm1, %v4244_v19  ;;  %v2372_v12 = vld [vmem:[%s5560_s9 + $0x60] sm:$0xff] }
 0x468   : > { %4066 = vmatprep.subr.bf16.mxu1 %v4242_v52  ;;  %v4130_v13 = vpack.c.bf16 %v2373_v15, %v2372_v12 }
 0x469   : > { %4092 = vmatpush3.bf16.msra.mxu0 %v4091_v18  ;;  %v4133_v18 = vpack.c.bf16 %v2375_v17, %v2374_v16 }
 0x46a   : > { %4093 = vmatprep.subr.bf16.mxu0 %v4242_v52 }
 0x46b   : > { %4068 = vmatpush3.bf16.msra.mxu1 %v4067_v22 }
 0x46c   : > { %4069 = vmatprep.subr.bf16.mxu1 %v4242_v52 }
 0x46d   : > { %4095 = vmatpush3.bf16.msra.mxu0 %v4094_v26 }
 0x46e   : > { %4096 = vmatprep.subr.bf16.mxu0 %v4242_v52 }
 0x46f   : > { %4071 = vmatpush3.bf16.msra.mxu1 %v4070_v29 }
 0x470   : > { %4072 = vmatprep.subr.bf16.mxu1 %v4242_v52 }
 0x471   : > { %4098 = vmatpush3.bf16.msra.mxu0 %v4097_v32 }
 0x472   : > { %4099 = vmatprep.subr.bf16.mxu0 %v4242_v52 }
 0x473   : > { %4074 = vmatpush3.bf16.msra.mxu1 %v4073_v34 }
 0x474   : > { %4075 = vmatprep.subr.bf16.mxu1 %v4242_v52 }
 0x475   : > { %4101 = vmatpush3.bf16.msra.mxu0 %v4100_v37 }
 0x476   : > { %4102 = vmatprep.subr.bf16.mxu0 %v4242_v52 }
 0x477   : > { %4077 = vmatpush3.bf16.msra.mxu1 %v4076_v39 }
 0x478   : > { %4078 = vmatprep.subr.bf16.mxu1 %v4242_v52 }
 0x479   : > { %4104 = vmatpush3.bf16.msra.mxu0 %v4103_v44 }
 0x47a   : > { %4105 = vmatprep.subr.bf16.mxu0 %v4242_v52 }
 0x47b   : > { %4080 = vmatpush3.bf16.msra.mxu1 %v4079_v58 }
 0x47c   : > { %4081 = vmatprep.subr.bf16.mxu1 %v4242_v52 }
 0x47d   : > { %4107 = vmatpush3.bf16.msra.mxu0 %v4106_v48 }
 0x47e   : > { %4108 = vmatprep.subr.bf16.mxu0 %v4242_v52 }
 0x47f   : > { %4083 = vmatpush3.bf16.msra.mxu1 %v4082_v4 }
 0x480   : > { %4084 = vmatprep.subr.bf16.mxu1 %v4242_v52 }
 0x481   : > { %4110 = vmatpush3.bf16.msra.mxu0 %v4109_v55 }
 0x483   : > { %4086 = vmatpush3.bf16.msra.mxu1 %v4085_v56 }
 0x484   : > { %3682 = vmatmul.mubr.f32.vlgmr.msra.gmra.mrb[80].mxu0 %v2284_v14  ;;  %4111 = vmatprep.subr.bf16.mxu1 %v4242_v52 }
 0x486   : > { %3647 = vmatmul.mubr.f32.vlgmr.msra.gmra.mrb[58].mxu1 %v2194_v57 }
 0x487   : > { %3716 = vmatprep.mubr.msk.f32.mxu1 %vm4243_vm1, %v4244_v19  ;;  %4113 = vmatpush3.bf16.msra.mxu1 %v4112_v41  ;;  %v2364_v19 = vld [vmem:[%s5560_s9 + $0x20] sm:$0xff] }
 0x488   : > { %4114 = vmatprep.subr.bf16.mxu1 %v4242_v52  ;;  %v4118_v0 = vpack.c.bf16 %v2365_v23, %v2364_v19 }
 0x48b   : > { %4116 = vmatpush3.bf16.msra.mxu1 %v4115_v63 }
 0x48c   : > { %4117 = vmatprep.subr.bf16.mxu1 %v4242_v52 }
 0x48f   : > { %4119 = vmatpush3.bf16.msra.mxu1 %v4118_v0 }
 0x490   : > { %4120 = vmatprep.subr.bf16.mxu1 %v4242_v52 }
 0x493   : > { %4122 = vmatpush3.bf16.msra.mxu1 %v4121_v2 }
 0x494   : > { %4123 = vmatprep.subr.bf16.mxu1 %v4242_v52 }
 0x497   : > { %4125 = vmatpush3.bf16.msra.mxu1 %v4124_v9 }
 0x498   : > { %4126 = vmatprep.subr.bf16.mxu1 %v4242_v52 }
 0x49b   : > { %4128 = vmatpush3.bf16.msra.mxu1 %v4127_v11 }
 0x49c   : > { %4129 = vmatprep.subr.bf16.mxu1 %v4242_v52 }
 0x49f   : > { %4131 = vmatpush3.bf16.msra.mxu1 %v4130_v13 }
 0x4a0   : > { %4132 = vmatprep.subr.bf16.mxu1 %v4242_v52 }
 0x4a3   : > { %4134 = vmatpush3.bf16.msra.mxu1 %v4133_v18 }
 0x537   : > { %v2173_v20 = vpop.f32.mrb[78].mxu0 }
 0x538   : > { %v3613_v21 = vpop.f32.mrb[79].mxu0 }
 0x539   : > { %v2103_v22 = vpop.f32.mrb[56].mxu1 }
 0x53a   : > { %v2174_v24 = vadd.f32 %v2173_v20, %v2103_v22  ;;  %v3578_v25 = vpop.f32.mrb[57].mxu1 }
 0x557   : > { %v2352_v26 = vpop.f32.mrb[80].mxu0 }
 0x558   : > { %v3683_v27 = vpop.f32.mrb[81].mxu0 }
 0x559   : > { %v2262_v52 = vpop.f32.mrb[58].mxu1 }
 0x55a   : > { %v2266_v28 = vadd.f32 %v2262_v52, %v2174_v24  ;;  %v3648_v29 = vpop.f32.mrb[59].mxu1 }
 0x55c   : > { %v2356_v31 = vadd.f32 %v2352_v26, %v2266_v28 }
 0x55e   : > { %v2358_v32 = vadd.f32 %v2357_v30, %v2356_v31 }
 0x560   : > { %v2359_v40 = vmax.f32 %v2358_v32, 0.0 }
 0x562   : > { %3717 = vmatmul.mubr.f32.vlgmr.msra.gmra.mrb[60].mxu1 %v2359_v40 }
 0x635   : > { %v2443_v34 = vpop.f32.mrb[60].mxu1 }
 0x636   : > { %v2444_v45 = vadd.f32 %v2443_v34, %v2376_v33  ;;  %v3718_v35 = vpop.f32.mrb[61].mxu1 }
 0x638   : > { %2447 = vst [vmem:[%s378_s29] sm:$0x1] %v2444_v45 }
 0x639   : > { %4191 = shalt.err (!%p4188_p3)
}
 0x63a   : > { %s4192_s16 = scalar_lea.hbm %s5509_s14, 16  ;;  %s4196_s26 = scalar_lea.hbm %s5562_s11, 32 }
 0x63b   : > { %p4193_p4 = scmp.ne.s32.totalorder %s5509_s14, %s4192_s16  ;;  %p4197_p9 = scmp.lt.u32.totalorder %s5509_s14, %s5562_s11 }
 0x63c   : > { %p4198_p10 = scmp.lt.u32.totalorder %s4196_s26, %s4192_s16  ;;  %p4200_p12 = scmp.lt.u32.totalorder %s4192_s16, %s5509_s14 }
 0x63d   : > { %p4194_p7 = pnand %p4193_p4, %p4344_p5 }
 0x63e   : > { %p4199_p11 = por %p4198_p10, %p4197_p9 }
 0x63f   : > { %p4195_p8 = pneg %p4194_p7 }
 0x640   : > { %p4201_p13 = por %p4200_p12, %p4199_p11 }
 0x642   : > { %p4202_p0 = pnand %p4201_p13, %p4195_p8 }
 0x644   : > { %4205 = shalt.err (!%p4202_p0)
}
 0x645   : > { %4136 = dma.vmem_to_hbm [thread:$0]  (%p4344_p5), %s5511_s30, 16, %s5509_s14, %s2449_s15  }
 0x646 PF: > { %p4142_p1 = scmp.ge.s32.totalorder %s4240_s20, 2  ;;  %s2473_s13 = sand.u32 1, %s4228_s17  }
 0x647   : > { %s2474_s22 = scalar_lea.sflag [#allocation5], %s2473_s13 }
 0x648   : > { %p4139_p2 = pnand %p4142_p1, %p4348_p6 }
 0x64a   : > { %4223 = dma.done.wait (!%p4139_p2), %s2474_s22, 16  }
 0x64b   : > { %4225 = vsyncadd (!%p4139_p2), %s2474_s22, 4294967280  ;;  %s5566_s24 = sld [smem:[#allocation7_spill]]  ;;  %p21_p3 = scmp.ge.s32.totalorder %s4331_s23, 4  }
 0x64c   : > { %s5567_s17 = smov %s4232_s18  ;;  %s5568_s18 = smov %s4236_s19 }
 0x64d   : > { %s5570_s20 = smov %s4331_s23  ;;  %23 = sbr.rel (!%p21_p3) target bundleno = 3 (0x3), region = 110 }
 0x651   : > { %s5569_s19 = smov %s5566_s24 }
 0x654   :  { %2478 = vsyncpa [#allocation5], 1 }
 0x655   :  { %2480 = vsyncpa [#allocation5 + $0x1], 1 }

</bundles_post_ra>
